<compile_context>
chip_gen: v5e
topology: v5e:2x2
jax: 0.10.0
libtpu: 0.0.40
codegen_flags: <defaults>
</compile_context>

<pallas_src>
import jax
import jax.numpy as jnp
from jax.experimental import pallas as pl
from jax.experimental.pallas import tpu as pltpu

EPS = 1e-5
K = 3


def _round_up(x, m):
    return (x + m - 1) // m * m


def _vmem_limit_bytes():
    """~80% of this generation's VMEM, capped at 100 MiB (v7x: ~51 MiB)."""
    try:
        cap = pltpu.get_tpu_info().vmem_capacity_bytes
    except Exception:
        cap = 64 * 1024 * 1024
    return max(32 * 1024 * 1024, min(int(cap * 0.8), 100 * 1024 * 1024))


# ---------------------------------------------------------------------------
# Shared helper: 3x3 SAME conv (no bias) on one (TH, W) row tile with a 1-row
# halo, computed as 9 accumulated bf16 MXU matmuls with an f32 accumulator.
# ---------------------------------------------------------------------------
def _conv3x3_tile(xc_ref, xt_ref, xb_ref, w1_ref, pad_ref):
    _, TH, W, Cin = xc_ref.shape
    Cmid = w1_ref.shape[2]
    h = pl.program_id(1)
    nh = pl.num_programs(1)

    # Halo rows: index maps clamp at the image borders; zero them there instead.
    top = jnp.where(h > 0, xt_ref[...], 0.0).reshape(1, W, Cin)
    bot = jnp.where(h < nh - 1, xb_ref[...], 0.0).reshape(1, W, Cin)

    # Build the (TH+2, W+2, Cin) padded tile; only the read halo strips are zeroed
    # (the right-side alignment padding of the scratch is never read).
    zcol = jnp.zeros((TH + 2, 1, Cin), jnp.float32)
    pad_ref[:, 0:1, :] = zcol                       # left halo column
    pad_ref[:, W + 1:W + 2, :] = zcol               # right halo column
    pad_ref[0:1, 1:W + 1, :] = top                  # top halo row
    pad_ref[1:TH + 1, 1:W + 1, :] = xc_ref[...].reshape(TH, W, Cin)
    pad_ref[TH + 1:TH + 2, 1:W + 1, :] = bot        # bottom halo row

    # 9 taps -> 9 accumulated matmuls (no im2col scratch).
    acc = jnp.zeros((TH * W, Cmid), jnp.float32)
    for dy in range(K):
        for dx in range(K):
            a = pad_ref[dy:dy + TH, dx:dx + W, :].reshape(TH * W, Cin)
            acc = acc + jnp.dot(a.astype(jnp.bfloat16), w1_ref[dy * K + dx],
                                preferred_element_type=jnp.float32)
    return acc


# ---------------------------------------------------------------------------
# Pass 1: conv3x3 per tile -> partial BN statistics (sum, sum of squares) only.
# ---------------------------------------------------------------------------
def conv3x3_stats_kernel(xc_ref, xt_ref, xb_ref, w1_ref, stats_ref, pad_ref):
    y = _conv3x3_tile(xc_ref, xt_ref, xb_ref, w1_ref, pad_ref)
    stats_ref[0, 0:1, :] = jnp.sum(y, axis=0, keepdims=True)
    stats_ref[0, 1:2, :] = jnp.sum(y * y, axis=0, keepdims=True)


# ---------------------------------------------------------------------------
# Pass 2: recompute conv3x3, then folded BN (scale/shift) + ReLU + 1x1 conv + bias.
# ---------------------------------------------------------------------------
def bn_relu_conv1x1_kernel(xc_ref, xt_ref, xb_ref, w1_ref, scale_ref, shift_ref,
                           w2_ref, b2_ref, o_ref, pad_ref):
    _, TH, W, _ = xc_ref.shape
    Cout = w2_ref.shape[1]

    y = _conv3x3_tile(xc_ref, xt_ref, xb_ref, w1_ref, pad_ref)       # f32
    a = jnp.maximum(y * scale_ref[...] + shift_ref[...], 0.0)        # BN + ReLU (f32)
    # TODO(synk): training-mode Dropout(0.1) (random mask + 1/0.9 scale) not
    #             implemented; eval-mode Dropout is the identity applied here.
    o = jnp.dot(a.astype(jnp.bfloat16), w2_ref[...],
                preferred_element_type=jnp.float32) + b2_ref[...]
    o_ref[...] = o.reshape(1, TH, W, Cout).astype(o_ref.dtype)


# ---------------------------------------------------------------------------
# Wrapper
# ---------------------------------------------------------------------------
def fcn_head(x_nchw, params, *, tile_h=8):
    """x_nchw: (N, Cin, H, W) f32.
    params: w1 (Cmid,Cin,3,3) OIHW (no bias), g/be (Cmid,) BN affine,
            w2 (Cout,Cmid,1,1) OIHW, b2 (Cout,)."""
    N, Cin, H, W = x_nchw.shape
    Cmid = params["w1"].shape[0]
    Cout = params["w2"].shape[0]

    TH = tile_h if H % tile_h == 0 else H
    NH = H // TH
    Wp = _round_up(W + 2, 8)                       # sublane-aligned scratch width

    # --- layout glue (true channel widths everywhere; weights pre-cast to bf16) ---
    x = jnp.transpose(x_nchw, (0, 2, 3, 1)).astype(jnp.float32)       # NCHW -> NHWC
    w1 = jnp.transpose(params["w1"], (2, 3, 1, 0)).reshape(K * K, Cin, Cmid)
    w1 = w1.astype(jnp.bfloat16)                                      # (9, Cin, Cmid)
    w2 = params["w2"][:, :, 0, 0].T.astype(jnp.bfloat16)              # (Cmid, Cout)
    b2 = params["b2"].reshape(1, Cout).astype(jnp.float32)
    gamma = params["g"].astype(jnp.float32)
    beta = params["be"].astype(jnp.float32)

    cparams = pltpu.CompilerParams(
        dimension_semantics=("parallel", "parallel"),
        vmem_limit_bytes=_vmem_limit_bytes())

    center_spec = pl.BlockSpec((1, TH, W, Cin), lambda n, h: (n, h, 0, 0))
    top_spec = pl.BlockSpec((1, 1, W, Cin),
                            lambda n, h: (n, jnp.maximum(h * TH - 1, 0), 0, 0))
    bot_spec = pl.BlockSpec((1, 1, W, Cin),
                            lambda n, h: (n, jnp.minimum(h * TH + TH, H - 1), 0, 0))
    w1_spec = pl.BlockSpec((K * K, Cin, Cmid), lambda n, h: (0, 0, 0))
    pad_scratch = pltpu.VMEM((TH + 2, Wp, Cin), jnp.float32)

    # ---- pass 1: partial BN statistics per (image, row-tile) ----
    stats = pl.pallas_call(
        conv3x3_stats_kernel,
        out_shape=jax.ShapeDtypeStruct((N * NH, 2, Cmid), jnp.float32),
        grid_spec=pltpu.PrefetchScalarGridSpec(
            num_scalar_prefetch=0, grid=(N, NH),
            in_specs=[center_spec, top_spec, bot_spec, w1_spec],
            out_specs=pl.BlockSpec((1, 2, Cmid), lambda n, h: (n * NH + h, 0, 0)),
            scratch_shapes=[pad_scratch]),
        compiler_params=cparams,
    )(x, x, x, w1)

    # ---- finalize GLOBAL BN stats (tiny per-channel math, f32) ----
    # Note: E[y^2]-E[y]^2 can cancel badly for large-magnitude activations; fine here.
    cnt = jnp.float32(N * H * W)
    mean = jnp.sum(stats[:, 0, :], axis=0) / cnt
    var = jnp.sum(stats[:, 1, :], axis=0) / cnt - mean * mean          # biased var
    scale_c = gamma * jax.lax.rsqrt(var + EPS)
    shift_c = beta - mean * scale_c
    scale = scale_c.reshape(1, Cmid)
    shift = shift_c.reshape(1, Cmid)

    # ---- pass 2: conv3x3 (recompute) + BN + ReLU + 1x1 conv + bias ----
    out = pl.pallas_call(
        bn_relu_conv1x1_kernel,
        out_shape=jax.ShapeDtypeStruct((N, H, W, Cout), jnp.float32),
        grid_spec=pltpu.PrefetchScalarGridSpec(
            num_scalar_prefetch=0, grid=(N, NH),
            in_specs=[center_spec, top_spec, bot_spec, w1_spec,
                      pl.BlockSpec((1, Cmid), lambda n, h: (0, 0)),
                      pl.BlockSpec((1, Cmid), lambda n, h: (0, 0)),
                      pl.BlockSpec((Cmid, Cout), lambda n, h: (0, 0)),
                      pl.BlockSpec((1, Cout), lambda n, h: (0, 0))],
            out_specs=pl.BlockSpec((1, TH, W, Cout), lambda n, h: (n, h, 0, 0)),
            scratch_shapes=[pad_scratch]),
        compiler_params=cparams,
    )(x, x, x, w1, scale, shift, w2, b2)

    return jnp.transpose(out, (0, 3, 1, 2))                            # NHWC -> NCHW


# ---------------- pure-JAX reference (PyTorch forward semantics) ----------------
def fcn_head_ref(x_nchw, params, matmul_dtype=jnp.float32):
    """matmul_dtype=f32 -> exact module semantics; bf16 -> same MXU numerics as kernel."""
    x = jnp.transpose(x_nchw, (0, 2, 3, 1))
    w1 = jnp.transpose(params["w1"], (2, 3, 1, 0))
    y = jax.lax.conv_general_dilated(
        x.astype(matmul_dtype), w1.astype(matmul_dtype),
        window_strides=(1, 1), padding="SAME",
        dimension_numbers=("NHWC", "HWIO", "NHWC"),
        preferred_element_type=jnp.float32)
    mean = jnp.mean(y, axis=(0, 1, 2), keepdims=True)
    var = jnp.mean((y - mean) ** 2, axis=(0, 1, 2), keepdims=True)
    yn = (y - mean) * jax.lax.rsqrt(var + EPS) * params["g"].reshape(1, 1, 1, -1) \
         + params["be"].reshape(1, 1, 1, -1)
    a = jnp.maximum(yn, 0.0)
    # Dropout(0.1): identity in eval mode
    w2 = params["w2"][:, :, 0, 0]                                      # (Cout, Cmid)
    o = jnp.einsum("nhwc,oc->nhwo", a.astype(matmul_dtype), w2.astype(matmul_dtype),
                   preferred_element_type=jnp.float32) \
        + params["b2"].reshape(1, 1, 1, -1)
    return jnp.transpose(o, (0, 3, 1, 2))


if __name__ == "__main__":
    # FCNHead(in_channels=16, channels=16) -> inter_channels = 8
    N, Cin, H, W = 2, 16, 16, 16
    Cmid = Cin // 2
    Cout = 16

    key = jax.random.PRNGKey(0)
    k = jax.random.split(key, 6)
    x = jax.random.normal(k[0], (N, Cin, H, W), jnp.float32)
    params = {
        "w1": 0.1 * jax.random.normal(k[1], (Cmid, Cin, K, K), jnp.float32),   # OIHW
        "g": 1.0 + 0.1 * jax.random.normal(k[2], (Cmid,), jnp.float32),
        "be": 0.1 * jax.random.normal(k[3], (Cmid,), jnp.float32),
        "w2": 0.1 * jax.random.normal(k[4], (Cout, Cmid, 1, 1), jnp.float32),  # OIHW
        "b2": 0.05 * jax.random.normal(k[5], (Cout,), jnp.float32),
    }

    out = jax.block_until_ready(jax.jit(fcn_head)(x, params))
    assert out.shape == (N, Cout, H, W)

    # Tight check against a reference using the same bf16-MXU numerics as the kernel.
    ref_bf16 = jax.block_until_ready(fcn_head_ref(x, params, jnp.bfloat16))
    err_b = float(jnp.max(jnp.abs(out - ref_bf16)))
    assert jnp.allclose(out, ref_bf16, rtol=5e-3, atol=5e-3), f"bf16-ref max err {err_b}"

    # Module-semantics check against the full-f32 reference (bf16-MXU tolerance).
    ref_f32 = jax.block_until_ready(fcn_head_ref(x, params, jnp.float32))
    err_f = float(jnp.max(jnp.abs(out - ref_f32)))
    assert jnp.allclose(out, ref_f32, rtol=5e-2, atol=5e-2), f"f32-ref max err {err_f}"

    print("KERNEL_OK")
</pallas_src>

<mosaic_0001>
module attributes {stable_mosaic.version = 11 : i64} {
  func.func @conv3x3_stats_kernel(%arg0: i32, %arg1: i32, %arg2: memref<1x8x16x16xf32, #tpu.memory_space<vmem>>, %arg3: memref<1x1x16x16xf32, #tpu.memory_space<vmem>>, %arg4: memref<1x1x16x16xf32, #tpu.memory_space<vmem>>, %arg5: memref<9x16x8xbf16, #tpu.memory_space<vmem>>, %arg6: memref<1x2x8xf32, #tpu.memory_space<vmem>>, %arg7: memref<10x24x16xf32, #tpu.memory_space<vmem>>) attributes {dimension_semantics = [#tpu.dimension_semantics<parallel>, #tpu.dimension_semantics<parallel>], iteration_bounds = array<i64: 2, 2>, scalar_prefetch = 0 : i64, scratch_operands = 1 : i64, tpu.core_type = #tpu.core_type<tc>, window_params = [{transform_indices = @transform_0, window_bounds = array<i64: 1, 8, 16, 16>}, {transform_indices = @transform_1, window_bounds = array<i64: 1, 1, 16, 16>}, {transform_indices = @transform_2, window_bounds = array<i64: 1, 1, 16, 16>}, {pipeline_mode = #tpu.pipeline_mode<synchronous>, transform_indices = @transform_3, window_bounds = array<i64: 9, 16, 8>}, {transform_indices = @transform_4, window_bounds = array<i64: 1, 2, 8>}]} {
    %c0_i32 = arith.constant 0 : i32
    %0 = arith.cmpi sgt, %arg1, %c0_i32 : i32
    %c0 = arith.constant 0 : index
    %c0_0 = arith.constant 0 : index
    %c0_1 = arith.constant 0 : index
    %c0_2 = arith.constant 0 : index
    %1 = vector.load %arg3[%c0, %c0_0, %c0_1, %c0_2] : memref<1x1x16x16xf32, #tpu.memory_space<vmem>>, vector<1x1x16x16xf32>
    %cst = arith.constant 0.000000e+00 : f32
    %2 = vector.broadcast %cst : f32 to vector<1x1x16x16xf32>
    %3 = arith.select %0, %1, %2 : vector<1x1x16x16xf32>
    %4 = vector.shape_cast %3 : vector<1x1x16x16xf32> to vector<1x16x16xf32>
    %c1_i32 = arith.constant 1 : i32
    %5 = arith.cmpi slt, %arg1, %c1_i32 : i32
    %c0_3 = arith.constant 0 : index
    %c0_4 = arith.constant 0 : index
    %c0_5 = arith.constant 0 : index
    %c0_6 = arith.constant 0 : index
    %6 = vector.load %arg4[%c0_3, %c0_4, %c0_5, %c0_6] : memref<1x1x16x16xf32, #tpu.memory_space<vmem>>, vector<1x1x16x16xf32>
    %cst_7 = arith.constant 0.000000e+00 : f32
    %7 = vector.broadcast %cst_7 : f32 to vector<1x1x16x16xf32>
    %8 = arith.select %5, %6, %7 : vector<1x1x16x16xf32>
    %9 = vector.shape_cast %8 : vector<1x1x16x16xf32> to vector<1x16x16xf32>
    %cst_8 = arith.constant 0.000000e+00 : f32
    %10 = vector.broadcast %cst_8 : f32 to vector<10x1x16xf32>
    %c0_9 = arith.constant 0 : index
    %c0_10 = arith.constant 0 : index
    %c0_11 = arith.constant 0 : index
    %11 = vector.load %arg7[%c0_9, %c0_10, %c0_11] : memref<10x24x16xf32, #tpu.memory_space<vmem>>, vector<10x1x16xf32>
    tpu.vector_store %arg7[%c0_9, %c0_10, %c0_11], %10 {strides = array<i32>} : memref<10x24x16xf32, #tpu.memory_space<vmem>>, vector<10x1x16xf32>,
    %c0_12 = arith.constant 0 : index
    %c17 = arith.constant 17 : index
    %c0_13 = arith.constant 0 : index
    %12 = vector.load %arg7[%c0_12, %c17, %c0_13] : memref<10x24x16xf32, #tpu.memory_space<vmem>>, vector<10x1x16xf32>
    tpu.vector_store %arg7[%c0_12, %c17, %c0_13], %10 {strides = array<i32>} : memref<10x24x16xf32, #tpu.memory_space<vmem>>, vector<10x1x16xf32>,
    %c0_14 = arith.constant 0 : index
    %c1 = arith.constant 1 : index
    %c0_15 = arith.constant 0 : index
    %13 = vector.load %arg7[%c0_14, %c1, %c0_15] : memref<10x24x16xf32, #tpu.memory_space<vmem>>, vector<1x16x16xf32>
    tpu.vector_store %arg7[%c0_14, %c1, %c0_15], %4 {strides = array<i32>} : memref<10x24x16xf32, #tpu.memory_space<vmem>>, vector<1x16x16xf32>,
    %c0_16 = arith.constant 0 : index
    %c0_17 = arith.constant 0 : index
    %c0_18 = arith.constant 0 : index
    %c0_19 = arith.constant 0 : index
    %14 = vector.load %arg2[%c0_16, %c0_17, %c0_18, %c0_19] : memref<1x8x16x16xf32, #tpu.memory_space<vmem>>, vector<1x8x16x16xf32>
    %15 = vector.shape_cast %14 : vector<1x8x16x16xf32> to vector<8x16x16xf32>
    %c1_20 = arith.constant 1 : index
    %c1_21 = arith.constant 1 : index
    %c0_22 = arith.constant 0 : index
    %16 = vector.load %arg7[%c1_20, %c1_21, %c0_22] : memref<10x24x16xf32, #tpu.memory_space<vmem>>, vector<8x16x16xf32>
    tpu.vector_store %arg7[%c1_20, %c1_21, %c0_22], %15 {strides = array<i32>} : memref<10x24x16xf32, #tpu.memory_space<vmem>>, vector<8x16x16xf32>,
    %c9 = arith.constant 9 : index
    %c1_23 = arith.constant 1 : index
    %c0_24 = arith.constant 0 : index
    %17 = vector.load %arg7[%c9, %c1_23, %c0_24] : memref<10x24x16xf32, #tpu.memory_space<vmem>>, vector<1x16x16xf32>
    tpu.vector_store %arg7[%c9, %c1_23, %c0_24], %9 {strides = array<i32>} : memref<10x24x16xf32, #tpu.memory_space<vmem>>, vector<1x16x16xf32>,
    %cst_25 = arith.constant 0.000000e+00 : f32
    %18 = vector.broadcast %cst_25 : f32 to vector<128x8xf32>
    %c0_26 = arith.constant 0 : index
    %c0_27 = arith.constant 0 : index
    %c0_28 = arith.constant 0 : index
    %19 = vector.load %arg7[%c0_26, %c0_27, %c0_28] : memref<10x24x16xf32, #tpu.memory_space<vmem>>, vector<8x16x16xf32>
    %20 = vector.shape_cast %19 : vector<8x16x16xf32> to vector<128x16xf32>
    %21 = arith.truncf %20 : vector<128x16xf32> to vector<128x16xbf16>
    %c0_29 = arith.constant 0 : index
    %c0_30 = arith.constant 0 : index
    %c0_31 = arith.constant 0 : index
    %22 = vector.load %arg5[%c0_29, %c0_30, %c0_31] : memref<9x16x8xbf16, #tpu.memory_space<vmem>>, vector<1x16x8xbf16>
    %23 = vector.shape_cast %22 : vector<1x16x8xbf16> to vector<16x8xbf16>
    %cst_32 = arith.constant dense<0.000000e+00> : vector<128x8xf32>
    %24 = tpu.matmul %21, %23, %cst_32 {dimension_numbers = #tpu.dot_dimension_numbers<[1], [0], [0], [1], [0, 0, 1, 1], [], []>} : vector<128x16xbf16>, vector<16x8xbf16>, vector<128x8xf32> -> vector<128x8xf32>
    %25 = arith.addf %18, %24 : vector<128x8xf32>
    %c0_33 = arith.constant 0 : index
    %c1_34 = arith.constant 1 : index
    %c0_35 = arith.constant 0 : index
    %26 = vector.load %arg7[%c0_33, %c1_34, %c0_35] : memref<10x24x16xf32, #tpu.memory_space<vmem>>, vector<8x16x16xf32>
    %27 = vector.shape_cast %26 : vector<8x16x16xf32> to vector<128x16xf32>
    %28 = arith.truncf %27 : vector<128x16xf32> to vector<128x16xbf16>
    %c1_36 = arith.constant 1 : index
    %c0_37 = arith.constant 0 : index
    %c0_38 = arith.constant 0 : index
    %29 = vector.load %arg5[%c1_36, %c0_37, %c0_38] : memref<9x16x8xbf16, #tpu.memory_space<vmem>>, vector<1x16x8xbf16>
    %30 = vector.shape_cast %29 : vector<1x16x8xbf16> to vector<16x8xbf16>
    %cst_39 = arith.constant dense<0.000000e+00> : vector<128x8xf32>
    %31 = tpu.matmul %28, %30, %cst_39 {dimension_numbers = #tpu.dot_dimension_numbers<[1], [0], [0], [1], [0, 0, 1, 1], [], []>} : vector<128x16xbf16>, vector<16x8xbf16>, vector<128x8xf32> -> vector<128x8xf32>
    %32 = arith.addf %25, %31 : vector<128x8xf32>
    %c0_40 = arith.constant 0 : index
    %c2 = arith.constant 2 : index
    %c0_41 = arith.constant 0 : index
    %33 = vector.load %arg7[%c0_40, %c2, %c0_41] : memref<10x24x16xf32, #tpu.memory_space<vmem>>, vector<8x16x16xf32>
    %34 = vector.shape_cast %33 : vector<8x16x16xf32> to vector<128x16xf32>
    %35 = arith.truncf %34 : vector<128x16xf32> to vector<128x16xbf16>
    %c2_42 = arith.constant 2 : index
    %c0_43 = arith.constant 0 : index
    %c0_44 = arith.constant 0 : index
    %36 = vector.load %arg5[%c2_42, %c0_43, %c0_44] : memref<9x16x8xbf16, #tpu.memory_space<vmem>>, vector<1x16x8xbf16>
    %37 = vector.shape_cast %36 : vector<1x16x8xbf16> to vector<16x8xbf16>
    %cst_45 = arith.constant dense<0.000000e+00> : vector<128x8xf32>
    %38 = tpu.matmul %35, %37, %cst_45 {dimension_numbers = #tpu.dot_dimension_numbers<[1], [0], [0], [1], [0, 0, 1, 1], [], []>} : vector<128x16xbf16>, vector<16x8xbf16>, vector<128x8xf32> -> vector<128x8xf32>
    %39 = arith.addf %32, %38 : vector<128x8xf32>
    %c1_46 = arith.constant 1 : index
    %c0_47 = arith.constant 0 : index
    %c0_48 = arith.constant 0 : index
    %40 = vector.load %arg7[%c1_46, %c0_47, %c0_48] : memref<10x24x16xf32, #tpu.memory_space<vmem>>, vector<8x16x16xf32>
    %41 = vector.shape_cast %40 : vector<8x16x16xf32> to vector<128x16xf32>
    %42 = arith.truncf %41 : vector<128x16xf32> to vector<128x16xbf16>
    %c3 = arith.constant 3 : index
    %c0_49 = arith.constant 0 : index
    %c0_50 = arith.constant 0 : index
    %43 = vector.load %arg5[%c3, %c0_49, %c0_50] : memref<9x16x8xbf16, #tpu.memory_space<vmem>>, vector<1x16x8xbf16>
    %44 = vector.shape_cast %43 : vector<1x16x8xbf16> to vector<16x8xbf16>
    %cst_51 = arith.constant dense<0.000000e+00> : vector<128x8xf32>
    %45 = tpu.matmul %42, %44, %cst_51 {dimension_numbers = #tpu.dot_dimension_numbers<[1], [0], [0], [1], [0, 0, 1, 1], [], []>} : vector<128x16xbf16>, vector<16x8xbf16>, vector<128x8xf32> -> vector<128x8xf32>
    %46 = arith.addf %39, %45 : vector<128x8xf32>
    %c1_52 = arith.constant 1 : index
    %c1_53 = arith.constant 1 : index
    %c0_54 = arith.constant 0 : index
    %47 = vector.load %arg7[%c1_52, %c1_53, %c0_54] : memref<10x24x16xf32, #tpu.memory_space<vmem>>, vector<8x16x16xf32>
    %48 = vector.shape_cast %47 : vector<8x16x16xf32> to vector<128x16xf32>
    %49 = arith.truncf %48 : vector<128x16xf32> to vector<128x16xbf16>
    %c4 = arith.constant 4 : index
    %c0_55 = arith.constant 0 : index
    %c0_56 = arith.constant 0 : index
    %50 = vector.load %arg5[%c4, %c0_55, %c0_56] : memref<9x16x8xbf16, #tpu.memory_space<vmem>>, vector<1x16x8xbf16>
    %51 = vector.shape_cast %50 : vector<1x16x8xbf16> to vector<16x8xbf16>
    %cst_57 = arith.constant dense<0.000000e+00> : vector<128x8xf32>
    %52 = tpu.matmul %49, %51, %cst_57 {dimension_numbers = #tpu.dot_dimension_numbers<[1], [0], [0], [1], [0, 0, 1, 1], [], []>} : vector<128x16xbf16>, vector<16x8xbf16>, vector<128x8xf32> -> vector<128x8xf32>
    %53 = arith.addf %46, %52 : vector<128x8xf32>
    %c1_58 = arith.constant 1 : index
    %c2_59 = arith.constant 2 : index
    %c0_60 = arith.constant 0 : index
    %54 = vector.load %arg7[%c1_58, %c2_59, %c0_60] : memref<10x24x16xf32, #tpu.memory_space<vmem>>, vector<8x16x16xf32>
    %55 = vector.shape_cast %54 : vector<8x16x16xf32> to vector<128x16xf32>
    %56 = arith.truncf %55 : vector<128x16xf32> to vector<128x16xbf16>
    %c5 = arith.constant 5 : index
    %c0_61 = arith.constant 0 : index
    %c0_62 = arith.constant 0 : index
    %57 = vector.load %arg5[%c5, %c0_61, %c0_62] : memref<9x16x8xbf16, #tpu.memory_space<vmem>>, vector<1x16x8xbf16>
    %58 = vector.shape_cast %57 : vector<1x16x8xbf16> to vector<16x8xbf16>
    %cst_63 = arith.constant dense<0.000000e+00> : vector<128x8xf32>
    %59 = tpu.matmul %56, %58, %cst_63 {dimension_numbers = #tpu.dot_dimension_numbers<[1], [0], [0], [1], [0, 0, 1, 1], [], []>} : vector<128x16xbf16>, vector<16x8xbf16>, vector<128x8xf32> -> vector<128x8xf32>
    %60 = arith.addf %53, %59 : vector<128x8xf32>
    %c2_64 = arith.constant 2 : index
    %c0_65 = arith.constant 0 : index
    %c0_66 = arith.constant 0 : index
    %61 = vector.load %arg7[%c2_64, %c0_65, %c0_66] : memref<10x24x16xf32, #tpu.memory_space<vmem>>, vector<8x16x16xf32>
    %62 = vector.shape_cast %61 : vector<8x16x16xf32> to vector<128x16xf32>
    %63 = arith.truncf %62 : vector<128x16xf32> to vector<128x16xbf16>
    %c6 = arith.constant 6 : index
    %c0_67 = arith.constant 0 : index
    %c0_68 = arith.constant 0 : index
    %64 = vector.load %arg5[%c6, %c0_67, %c0_68] : memref<9x16x8xbf16, #tpu.memory_space<vmem>>, vector<1x16x8xbf16>
    %65 = vector.shape_cast %64 : vector<1x16x8xbf16> to vector<16x8xbf16>
    %cst_69 = arith.constant dense<0.000000e+00> : vector<128x8xf32>
    %66 = tpu.matmul %63, %65, %cst_69 {dimension_numbers = #tpu.dot_dimension_numbers<[1], [0], [0], [1], [0, 0, 1, 1], [], []>} : vector<128x16xbf16>, vector<16x8xbf16>, vector<128x8xf32> -> vector<128x8xf32>
    %67 = arith.addf %60, %66 : vector<128x8xf32>
    %c2_70 = arith.constant 2 : index
    %c1_71 = arith.constant 1 : index
    %c0_72 = arith.constant 0 : index
    %68 = vector.load %arg7[%c2_70, %c1_71, %c0_72] : memref<10x24x16xf32, #tpu.memory_space<vmem>>, vector<8x16x16xf32>
    %69 = vector.shape_cast %68 : vector<8x16x16xf32> to vector<128x16xf32>
    %70 = arith.truncf %69 : vector<128x16xf32> to vector<128x16xbf16>
    %c7 = arith.constant 7 : index
    %c0_73 = arith.constant 0 : index
    %c0_74 = arith.constant 0 : index
    %71 = vector.load %arg5[%c7, %c0_73, %c0_74] : memref<9x16x8xbf16, #tpu.memory_space<vmem>>, vector<1x16x8xbf16>
    %72 = vector.shape_cast %71 : vector<1x16x8xbf16> to vector<16x8xbf16>
    %cst_75 = arith.constant dense<0.000000e+00> : vector<128x8xf32>
    %73 = tpu.matmul %70, %72, %cst_75 {dimension_numbers = #tpu.dot_dimension_numbers<[1], [0], [0], [1], [0, 0, 1, 1], [], []>} : vector<128x16xbf16>, vector<16x8xbf16>, vector<128x8xf32> -> vector<128x8xf32>
    %74 = arith.addf %67, %73 : vector<128x8xf32>
    %c2_76 = arith.constant 2 : index
    %c2_77 = arith.constant 2 : index
    %c0_78 = arith.constant 0 : index
    %75 = vector.load %arg7[%c2_76, %c2_77, %c0_78] : memref<10x24x16xf32, #tpu.memory_space<vmem>>, vector<8x16x16xf32>
    %76 = vector.shape_cast %75 : vector<8x16x16xf32> to vector<128x16xf32>
    %77 = arith.truncf %76 : vector<128x16xf32> to vector<128x16xbf16>
    %c8 = arith.constant 8 : index
    %c0_79 = arith.constant 0 : index
    %c0_80 = arith.constant 0 : index
    %78 = vector.load %arg5[%c8, %c0_79, %c0_80] : memref<9x16x8xbf16, #tpu.memory_space<vmem>>, vector<1x16x8xbf16>
    %79 = vector.shape_cast %78 : vector<1x16x8xbf16> to vector<16x8xbf16>
    %cst_81 = arith.constant dense<0.000000e+00> : vector<128x8xf32>
    %80 = tpu.matmul %77, %79, %cst_81 {dimension_numbers = #tpu.dot_dimension_numbers<[1], [0], [0], [1], [0, 0, 1, 1], [], []>} : vector<128x16xbf16>, vector<16x8xbf16>, vector<128x8xf32> -> vector<128x8xf32>
    %81 = arith.addf %74, %80 : vector<128x8xf32>
    %cst_82 = arith.constant dense<0.000000e+00> : vector<8xf32>
    %82 = vector.multi_reduction <add>, %81, %cst_82 [0] : vector<128x8xf32> to vector<8xf32>
    %83 = vector.shape_cast %82 : vector<8xf32> to vector<1x8xf32>
    %c0_83 = arith.constant 0 : index
    %c0_84 = arith.constant 0 : index
    %c0_85 = arith.constant 0 : index
    %84 = vector.load %arg6[%c0_83, %c0_84, %c0_85] : memref<1x2x8xf32, #tpu.memory_space<vmem>>, vector<1x1x8xf32>
    %85 = vector.shape_cast %84 : vector<1x1x8xf32> to vector<1x8xf32>
    %86 = vector.shape_cast %83 : vector<1x8xf32> to vector<1x1x8xf32>
    tpu.vector_store %arg6[%c0_83, %c0_84, %c0_85], %86 {strides = array<i32>} : memref<1x2x8xf32, #tpu.memory_space<vmem>>, vector<1x1x8xf32>,
    %87 = arith.mulf %81, %81 : vector<128x8xf32>
    %cst_86 = arith.constant dense<0.000000e+00> : vector<8xf32>
    %88 = vector.multi_reduction <add>, %87, %cst_86 [0] : vector<128x8xf32> to vector<8xf32>
    %89 = vector.shape_cast %88 : vector<8xf32> to vector<1x8xf32>
    %c0_87 = arith.constant 0 : index
    %c1_88 = arith.constant 1 : index
    %c0_89 = arith.constant 0 : index
    %90 = vector.load %arg6[%c0_87, %c1_88, %c0_89] : memref<1x2x8xf32, #tpu.memory_space<vmem>>, vector<1x1x8xf32>
    %91 = vector.shape_cast %90 : vector<1x1x8xf32> to vector<1x8xf32>
    %92 = vector.shape_cast %89 : vector<1x8xf32> to vector<1x1x8xf32>
    tpu.vector_store %arg6[%c0_87, %c1_88, %c0_89], %92 {strides = array<i32>} : memref<1x2x8xf32, #tpu.memory_space<vmem>>, vector<1x1x8xf32>,
    return
  }
  func.func @transform_0(%arg0: i32, %arg1: i32) -> (i32, i32, i32, i32) {
    %c0_i32 = arith.constant 0 : i32
    %c0_i32_0 = arith.constant 0 : i32
    %c0_i32_1 = arith.constant 0 : i32
    return %arg0, %arg1, %c0_i32, %c0_i32_0 : i32, i32, i32, i32
  }
  func.func @transform_1(%arg0: i32, %arg1: i32) -> (i32, i32, i32, i32) {
    %c8_i32 = arith.constant 8 : i32
    %0 = arith.muli %arg1, %c8_i32 : i32
    %c1_i32 = arith.constant 1 : i32
    %1 = arith.subi %0, %c1_i32 : i32
    %c0_i32 = arith.constant 0 : i32
    %2 = arith.maxsi %1, %c0_i32 : i32
    %c0_i32_0 = arith.constant 0 : i32
    %c0_i32_1 = arith.constant 0 : i32
    %c0_i32_2 = arith.constant 0 : i32
    return %arg0, %2, %c0_i32_0, %c0_i32_1 : i32, i32, i32, i32
  }
  func.func @transform_2(%arg0: i32, %arg1: i32) -> (i32, i32, i32, i32) {
    %c8_i32 = arith.constant 8 : i32
    %0 = arith.muli %arg1, %c8_i32 : i32
    %c8_i32_0 = arith.constant 8 : i32
    %1 = arith.addi %0, %c8_i32_0 : i32
    %c15_i32 = arith.constant 15 : i32
    %2 = arith.minsi %1, %c15_i32 : i32
    %c0_i32 = arith.constant 0 : i32
    %c0_i32_1 = arith.constant 0 : i32
    %c0_i32_2 = arith.constant 0 : i32
    return %arg0, %2, %c0_i32, %c0_i32_1 : i32, i32, i32, i32
  }
  func.func @transform_3(%arg0: i32, %arg1: i32) -> (i32, i32, i32) {
    %c0_i32 = arith.constant 0 : i32
    %c0_i32_0 = arith.constant 0 : i32
    %c0_i32_1 = arith.constant 0 : i32
    %c0_i32_2 = arith.constant 0 : i32
    return %c0_i32, %c0_i32_0, %c0_i32_1 : i32, i32, i32
  }
  func.func @transform_4(%arg0: i32, %arg1: i32) -> (i32, i32, i32) {
    %c2_i32 = arith.constant 2 : i32
    %0 = arith.muli %arg0, %c2_i32 : i32
    %1 = arith.addi %0, %arg1 : i32
    %c0_i32 = arith.constant 0 : i32
    %c0_i32_0 = arith.constant 0 : i32
    %c0_i32_1 = arith.constant 0 : i32
    return %1, %c0_i32, %c0_i32_0 : i32, i32, i32
  }
}

module attributes {stable_mosaic.version = 11 : i64} {
  func.func @bn_relu_conv1x1_kernel(%arg0: i32, %arg1: i32, %arg2: memref<1x8x16x16xf32, #tpu.memory_space<vmem>>, %arg3: memref<1x1x16x16xf32, #tpu.memory_space<vmem>>, %arg4: memref<1x1x16x16xf32, #tpu.memory_space<vmem>>, %arg5: memref<9x16x8xbf16, #tpu.memory_space<vmem>>, %arg6: memref<1x8xf32, #tpu.memory_space<vmem>>, %arg7: memref<1x8xf32, #tpu.memory_space<vmem>>, %arg8: memref<8x16xbf16, #tpu.memory_space<vmem>>, %arg9: memref<1x16xf32, #tpu.memory_space<vmem>>, %arg10: memref<1x8x16x16xf32, #tpu.memory_space<vmem>>, %arg11: memref<10x24x16xf32, #tpu.memory_space<vmem>>) attributes {dimension_semantics = [#tpu.dimension_semantics<parallel>, #tpu.dimension_semantics<parallel>], iteration_bounds = array<i64: 2, 2>, scalar_prefetch = 0 : i64, scratch_operands = 1 : i64, tpu.core_type = #tpu.core_type<tc>, window_params = [{transform_indices = @transform_0, window_bounds = array<i64: 1, 8, 16, 16>}, {transform_indices = @transform_1, window_bounds = array<i64: 1, 1, 16, 16>}, {transform_indices = @transform_2, window_bounds = array<i64: 1, 1, 16, 16>}, {pipeline_mode = #tpu.pipeline_mode<synchronous>, transform_indices = @transform_3, window_bounds = array<i64: 9, 16, 8>}, {pipeline_mode = #tpu.pipeline_mode<synchronous>, transform_indices = @transform_4, window_bounds = array<i64: 1, 8>}, {pipeline_mode = #tpu.pipeline_mode<synchronous>, transform_indices = @transform_5, window_bounds = array<i64: 1, 8>}, {pipeline_mode = #tpu.pipeline_mode<synchronous>, transform_indices = @transform_6, window_bounds = array<i64: 8, 16>}, {pipeline_mode = #tpu.pipeline_mode<synchronous>, transform_indices = @transform_7, window_bounds = array<i64: 1, 16>}, {transform_indices = @transform_8, window_bounds = array<i64: 1, 8, 16, 16>}]} {
    %c0_i32 = arith.constant 0 : i32
    %0 = arith.cmpi sgt, %arg1, %c0_i32 : i32
    %c0 = arith.constant 0 : index
    %c0_0 = arith.constant 0 : index
    %c0_1 = arith.constant 0 : index
    %c0_2 = arith.constant 0 : index
    %1 = vector.load %arg3[%c0, %c0_0, %c0_1, %c0_2] : memref<1x1x16x16xf32, #tpu.memory_space<vmem>>, vector<1x1x16x16xf32>
    %cst = arith.constant 0.000000e+00 : f32
    %2 = vector.broadcast %cst : f32 to vector<1x1x16x16xf32>
    %3 = arith.select %0, %1, %2 : vector<1x1x16x16xf32>
    %4 = vector.shape_cast %3 : vector<1x1x16x16xf32> to vector<1x16x16xf32>
    %c1_i32 = arith.constant 1 : i32
    %5 = arith.cmpi slt, %arg1, %c1_i32 : i32
    %c0_3 = arith.constant 0 : index
    %c0_4 = arith.constant 0 : index
    %c0_5 = arith.constant 0 : index
    %c0_6 = arith.constant 0 : index
    %6 = vector.load %arg4[%c0_3, %c0_4, %c0_5, %c0_6] : memref<1x1x16x16xf32, #tpu.memory_space<vmem>>, vector<1x1x16x16xf32>
    %cst_7 = arith.constant 0.000000e+00 : f32
    %7 = vector.broadcast %cst_7 : f32 to vector<1x1x16x16xf32>
    %8 = arith.select %5, %6, %7 : vector<1x1x16x16xf32>
    %9 = vector.shape_cast %8 : vector<1x1x16x16xf32> to vector<1x16x16xf32>
    %cst_8 = arith.constant 0.000000e+00 : f32
    %10 = vector.broadcast %cst_8 : f32 to vector<10x1x16xf32>
    %c0_9 = arith.constant 0 : index
    %c0_10 = arith.constant 0 : index
    %c0_11 = arith.constant 0 : index
    %11 = vector.load %arg11[%c0_9, %c0_10, %c0_11] : memref<10x24x16xf32, #tpu.memory_space<vmem>>, vector<10x1x16xf32>
    tpu.vector_store %arg11[%c0_9, %c0_10, %c0_11], %10 {strides = array<i32>} : memref<10x24x16xf32, #tpu.memory_space<vmem>>, vector<10x1x16xf32>,
    %c0_12 = arith.constant 0 : index
    %c17 = arith.constant 17 : index
    %c0_13 = arith.constant 0 : index
    %12 = vector.load %arg11[%c0_12, %c17, %c0_13] : memref<10x24x16xf32, #tpu.memory_space<vmem>>, vector<10x1x16xf32>
    tpu.vector_store %arg11[%c0_12, %c17, %c0_13], %10 {strides = array<i32>} : memref<10x24x16xf32, #tpu.memory_space<vmem>>, vector<10x1x16xf32>,
    %c0_14 = arith.constant 0 : index
    %c1 = arith.constant 1 : index
    %c0_15 = arith.constant 0 : index
    %13 = vector.load %arg11[%c0_14, %c1, %c0_15] : memref<10x24x16xf32, #tpu.memory_space<vmem>>, vector<1x16x16xf32>
    tpu.vector_store %arg11[%c0_14, %c1, %c0_15], %4 {strides = array<i32>} : memref<10x24x16xf32, #tpu.memory_space<vmem>>, vector<1x16x16xf32>,
    %c0_16 = arith.constant 0 : index
    %c0_17 = arith.constant 0 : index
    %c0_18 = arith.constant 0 : index
    %c0_19 = arith.constant 0 : index
    %14 = vector.load %arg2[%c0_16, %c0_17, %c0_18, %c0_19] : memref<1x8x16x16xf32, #tpu.memory_space<vmem>>, vector<1x8x16x16xf32>
    %15 = vector.shape_cast %14 : vector<1x8x16x16xf32> to vector<8x16x16xf32>
    %c1_20 = arith.constant 1 : index
    %c1_21 = arith.constant 1 : index
    %c0_22 = arith.constant 0 : index
    %16 = vector.load %arg11[%c1_20, %c1_21, %c0_22] : memref<10x24x16xf32, #tpu.memory_space<vmem>>, vector<8x16x16xf32>
    tpu.vector_store %arg11[%c1_20, %c1_21, %c0_22], %15 {strides = array<i32>} : memref<10x24x16xf32, #tpu.memory_space<vmem>>, vector<8x16x16xf32>,
    %c9 = arith.constant 9 : index
    %c1_23 = arith.constant 1 : index
    %c0_24 = arith.constant 0 : index
    %17 = vector.load %arg11[%c9, %c1_23, %c0_24] : memref<10x24x16xf32, #tpu.memory_space<vmem>>, vector<1x16x16xf32>
    tpu.vector_store %arg11[%c9, %c1_23, %c0_24], %9 {strides = array<i32>} : memref<10x24x16xf32, #tpu.memory_space<vmem>>, vector<1x16x16xf32>,
    %cst_25 = arith.constant 0.000000e+00 : f32
    %18 = vector.broadcast %cst_25 : f32 to vector<128x8xf32>
    %c0_26 = arith.constant 0 : index
    %c0_27 = arith.constant 0 : index
    %c0_28 = arith.constant 0 : index
    %19 = vector.load %arg11[%c0_26, %c0_27, %c0_28] : memref<10x24x16xf32, #tpu.memory_space<vmem>>, vector<8x16x16xf32>
    %20 = vector.shape_cast %19 : vector<8x16x16xf32> to vector<128x16xf32>
    %21 = arith.truncf %20 : vector<128x16xf32> to vector<128x16xbf16>
    %c0_29 = arith.constant 0 : index
    %c0_30 = arith.constant 0 : index
    %c0_31 = arith.constant 0 : index
    %22 = vector.load %arg5[%c0_29, %c0_30, %c0_31] : memref<9x16x8xbf16, #tpu.memory_space<vmem>>, vector<1x16x8xbf16>
    %23 = vector.shape_cast %22 : vector<1x16x8xbf16> to vector<16x8xbf16>
    %cst_32 = arith.constant dense<0.000000e+00> : vector<128x8xf32>
    %24 = tpu.matmul %21, %23, %cst_32 {dimension_numbers = #tpu.dot_dimension_numbers<[1], [0], [0], [1], [0, 0, 1, 1], [], []>} : vector<128x16xbf16>, vector<16x8xbf16>, vector<128x8xf32> -> vector<128x8xf32>
    %25 = arith.addf %18, %24 : vector<128x8xf32>
    %c0_33 = arith.constant 0 : index
    %c1_34 = arith.constant 1 : index
    %c0_35 = arith.constant 0 : index
    %26 = vector.load %arg11[%c0_33, %c1_34, %c0_35] : memref<10x24x16xf32, #tpu.memory_space<vmem>>, vector<8x16x16xf32>
    %27 = vector.shape_cast %26 : vector<8x16x16xf32> to vector<128x16xf32>
    %28 = arith.truncf %27 : vector<128x16xf32> to vector<128x16xbf16>
    %c1_36 = arith.constant 1 : index
    %c0_37 = arith.constant 0 : index
    %c0_38 = arith.constant 0 : index
    %29 = vector.load %arg5[%c1_36, %c0_37, %c0_38] : memref<9x16x8xbf16, #tpu.memory_space<vmem>>, vector<1x16x8xbf16>
    %30 = vector.shape_cast %29 : vector<1x16x8xbf16> to vector<16x8xbf16>
    %cst_39 = arith.constant dense<0.000000e+00> : vector<128x8xf32>
    %31 = tpu.matmul %28, %30, %cst_39 {dimension_numbers = #tpu.dot_dimension_numbers<[1], [0], [0], [1], [0, 0, 1, 1], [], []>} : vector<128x16xbf16>, vector<16x8xbf16>, vector<128x8xf32> -> vector<128x8xf32>
    %32 = arith.addf %25, %31 : vector<128x8xf32>
    %c0_40 = arith.constant 0 : index
    %c2 = arith.constant 2 : index
    %c0_41 = arith.constant 0 : index
    %33 = vector.load %arg11[%c0_40, %c2, %c0_41] : memref<10x24x16xf32, #tpu.memory_space<vmem>>, vector<8x16x16xf32>
    %34 = vector.shape_cast %33 : vector<8x16x16xf32> to vector<128x16xf32>
    %35 = arith.truncf %34 : vector<128x16xf32> to vector<128x16xbf16>
    %c2_42 = arith.constant 2 : index
    %c0_43 = arith.constant 0 : index
    %c0_44 = arith.constant 0 : index
    %36 = vector.load %arg5[%c2_42, %c0_43, %c0_44] : memref<9x16x8xbf16, #tpu.memory_space<vmem>>, vector<1x16x8xbf16>
    %37 = vector.shape_cast %36 : vector<1x16x8xbf16> to vector<16x8xbf16>
    %cst_45 = arith.constant dense<0.000000e+00> : vector<128x8xf32>
    %38 = tpu.matmul %35, %37, %cst_45 {dimension_numbers = #tpu.dot_dimension_numbers<[1], [0], [0], [1], [0, 0, 1, 1], [], []>} : vector<128x16xbf16>, vector<16x8xbf16>, vector<128x8xf32> -> vector<128x8xf32>
    %39 = arith.addf %32, %38 : vector<128x8xf32>
    %c1_46 = arith.constant 1 : index
    %c0_47 = arith.constant 0 : index
    %c0_48 = arith.constant 0 : index
    %40 = vector.load %arg11[%c1_46, %c0_47, %c0_48] : memref<10x24x16xf32, #tpu.memory_space<vmem>>, vector<8x16x16xf32>
    %41 = vector.shape_cast %40 : vector<8x16x16xf32> to vector<128x16xf32>
    %42 = arith.truncf %41 : vector<128x16xf32> to vector<128x16xbf16>
    %c3 = arith.constant 3 : index
    %c0_49 = arith.constant 0 : index
    %c0_50 = arith.constant 0 : index
    %43 = vector.load %arg5[%c3, %c0_49, %c0_50] : memref<9x16x8xbf16, #tpu.memory_space<vmem>>, vector<1x16x8xbf16>
    %44 = vector.shape_cast %43 : vector<1x16x8xbf16> to vector<16x8xbf16>
    %cst_51 = arith.constant dense<0.000000e+00> : vector<128x8xf32>
    %45 = tpu.matmul %42, %44, %cst_51 {dimension_numbers = #tpu.dot_dimension_numbers<[1], [0], [0], [1], [0, 0, 1, 1], [], []>} : vector<128x16xbf16>, vector<16x8xbf16>, vector<128x8xf32> -> vector<128x8xf32>
    %46 = arith.addf %39, %45 : vector<128x8xf32>
    %c1_52 = arith.constant 1 : index
    %c1_53 = arith.constant 1 : index
    %c0_54 = arith.constant 0 : index
    %47 = vector.load %arg11[%c1_52, %c1_53, %c0_54] : memref<10x24x16xf32, #tpu.memory_space<vmem>>, vector<8x16x16xf32>
    %48 = vector.shape_cast %47 : vector<8x16x16xf32> to vector<128x16xf32>
    %49 = arith.truncf %48 : vector<128x16xf32> to vector<128x16xbf16>
    %c4 = arith.constant 4 : index
    %c0_55 = arith.constant 0 : index
    %c0_56 = arith.constant 0 : index
    %50 = vector.load %arg5[%c4, %c0_55, %c0_56] : memref<9x16x8xbf16, #tpu.memory_space<vmem>>, vector<1x16x8xbf16>
    %51 = vector.shape_cast %50 : vector<1x16x8xbf16> to vector<16x8xbf16>
    %cst_57 = arith.constant dense<0.000000e+00> : vector<128x8xf32>
    %52 = tpu.matmul %49, %51, %cst_57 {dimension_numbers = #tpu.dot_dimension_numbers<[1], [0], [0], [1], [0, 0, 1, 1], [], []>} : vector<128x16xbf16>, vector<16x8xbf16>, vector<128x8xf32> -> vector<128x8xf32>
    %53 = arith.addf %46, %52 : vector<128x8xf32>
    %c1_58 = arith.constant 1 : index
    %c2_59 = arith.constant 2 : index
    %c0_60 = arith.constant 0 : index
    %54 = vector.load %arg11[%c1_58, %c2_59, %c0_60] : memref<10x24x16xf32, #tpu.memory_space<vmem>>, vector<8x16x16xf32>
    %55 = vector.shape_cast %54 : vector<8x16x16xf32> to vector<128x16xf32>
    %56 = arith.truncf %55 : vector<128x16xf32> to vector<128x16xbf16>
    %c5 = arith.constant 5 : index
    %c0_61 = arith.constant 0 : index
    %c0_62 = arith.constant 0 : index
    %57 = vector.load %arg5[%c5, %c0_61, %c0_62] : memref<9x16x8xbf16, #tpu.memory_space<vmem>>, vector<1x16x8xbf16>
    %58 = vector.shape_cast %57 : vector<1x16x8xbf16> to vector<16x8xbf16>
    %cst_63 = arith.constant dense<0.000000e+00> : vector<128x8xf32>
    %59 = tpu.matmul %56, %58, %cst_63 {dimension_numbers = #tpu.dot_dimension_numbers<[1], [0], [0], [1], [0, 0, 1, 1], [], []>} : vector<128x16xbf16>, vector<16x8xbf16>, vector<128x8xf32> -> vector<128x8xf32>
    %60 = arith.addf %53, %59 : vector<128x8xf32>
    %c2_64 = arith.constant 2 : index
    %c0_65 = arith.constant 0 : index
    %c0_66 = arith.constant 0 : index
    %61 = vector.load %arg11[%c2_64, %c0_65, %c0_66] : memref<10x24x16xf32, #tpu.memory_space<vmem>>, vector<8x16x16xf32>
    %62 = vector.shape_cast %61 : vector<8x16x16xf32> to vector<128x16xf32>
    %63 = arith.truncf %62 : vector<128x16xf32> to vector<128x16xbf16>
    %c6 = arith.constant 6 : index
    %c0_67 = arith.constant 0 : index
    %c0_68 = arith.constant 0 : index
    %64 = vector.load %arg5[%c6, %c0_67, %c0_68] : memref<9x16x8xbf16, #tpu.memory_space<vmem>>, vector<1x16x8xbf16>
    %65 = vector.shape_cast %64 : vector<1x16x8xbf16> to vector<16x8xbf16>
    %cst_69 = arith.constant dense<0.000000e+00> : vector<128x8xf32>
    %66 = tpu.matmul %63, %65, %cst_69 {dimension_numbers = #tpu.dot_dimension_numbers<[1], [0], [0], [1], [0, 0, 1, 1], [], []>} : vector<128x16xbf16>, vector<16x8xbf16>, vector<128x8xf32> -> vector<128x8xf32>
    %67 = arith.addf %60, %66 : vector<128x8xf32>
    %c2_70 = arith.constant 2 : index
    %c1_71 = arith.constant 1 : index
    %c0_72 = arith.constant 0 : index
    %68 = vector.load %arg11[%c2_70, %c1_71, %c0_72] : memref<10x24x16xf32, #tpu.memory_space<vmem>>, vector<8x16x16xf32>
    %69 = vector.shape_cast %68 : vector<8x16x16xf32> to vector<128x16xf32>
    %70 = arith.truncf %69 : vector<128x16xf32> to vector<128x16xbf16>
    %c7 = arith.constant 7 : index
    %c0_73 = arith.constant 0 : index
    %c0_74 = arith.constant 0 : index
    %71 = vector.load %arg5[%c7, %c0_73, %c0_74] : memref<9x16x8xbf16, #tpu.memory_space<vmem>>, vector<1x16x8xbf16>
    %72 = vector.shape_cast %71 : vector<1x16x8xbf16> to vector<16x8xbf16>
    %cst_75 = arith.constant dense<0.000000e+00> : vector<128x8xf32>
    %73 = tpu.matmul %70, %72, %cst_75 {dimension_numbers = #tpu.dot_dimension_numbers<[1], [0], [0], [1], [0, 0, 1, 1], [], []>} : vector<128x16xbf16>, vector<16x8xbf16>, vector<128x8xf32> -> vector<128x8xf32>
    %74 = arith.addf %67, %73 : vector<128x8xf32>
    %c2_76 = arith.constant 2 : index
    %c2_77 = arith.constant 2 : index
    %c0_78 = arith.constant 0 : index
    %75 = vector.load %arg11[%c2_76, %c2_77, %c0_78] : memref<10x24x16xf32, #tpu.memory_space<vmem>>, vector<8x16x16xf32>
    %76 = vector.shape_cast %75 : vector<8x16x16xf32> to vector<128x16xf32>
    %77 = arith.truncf %76 : vector<128x16xf32> to vector<128x16xbf16>
    %c8 = arith.constant 8 : index
    %c0_79 = arith.constant 0 : index
    %c0_80 = arith.constant 0 : index
    %78 = vector.load %arg5[%c8, %c0_79, %c0_80] : memref<9x16x8xbf16, #tpu.memory_space<vmem>>, vector<1x16x8xbf16>
    %79 = vector.shape_cast %78 : vector<1x16x8xbf16> to vector<16x8xbf16>
    %cst_81 = arith.constant dense<0.000000e+00> : vector<128x8xf32>
    %80 = tpu.matmul %77, %79, %cst_81 {dimension_numbers = #tpu.dot_dimension_numbers<[1], [0], [0], [1], [0, 0, 1, 1], [], []>} : vector<128x16xbf16>, vector<16x8xbf16>, vector<128x8xf32> -> vector<128x8xf32>
    %81 = arith.addf %74, %80 : vector<128x8xf32>
    %c0_82 = arith.constant 0 : index
    %c0_83 = arith.constant 0 : index
    %82 = vector.load %arg6[%c0_82, %c0_83] : memref<1x8xf32, #tpu.memory_space<vmem>>, vector<1x8xf32>
    %83 = vector.broadcast %82 : vector<1x8xf32> to vector<128x8xf32>
    %84 = arith.mulf %81, %83 : vector<128x8xf32>
    %c0_84 = arith.constant 0 : index
    %c0_85 = arith.constant 0 : index
    %85 = vector.load %arg7[%c0_84, %c0_85] : memref<1x8xf32, #tpu.memory_space<vmem>>, vector<1x8xf32>
    %86 = vector.broadcast %85 : vector<1x8xf32> to vector<128x8xf32>
    %87 = arith.addf %84, %86 : vector<128x8xf32>
    %cst_86 = arith.constant 0.000000e+00 : f32
    %88 = vector.broadcast %cst_86 : f32 to vector<128x8xf32>
    %89 = arith.maximumf %87, %88 : vector<128x8xf32>
    %90 = arith.truncf %89 : vector<128x8xf32> to vector<128x8xbf16>
    %c0_87 = arith.constant 0 : index
    %c0_88 = arith.constant 0 : index
    %91 = vector.load %arg8[%c0_87, %c0_88] : memref<8x16xbf16, #tpu.memory_space<vmem>>, vector<8x16xbf16>
    %cst_89 = arith.constant dense<0.000000e+00> : vector<128x16xf32>
    %92 = tpu.matmul %90, %91, %cst_89 {dimension_numbers = #tpu.dot_dimension_numbers<[1], [0], [0], [1], [0, 0, 1, 1], [], []>} : vector<128x8xbf16>, vector<8x16xbf16>, vector<128x16xf32> -> vector<128x16xf32>
    %c0_90 = arith.constant 0 : index
    %c0_91 = arith.constant 0 : index
    %93 = vector.load %arg9[%c0_90, %c0_91] : memref<1x16xf32, #tpu.memory_space<vmem>>, vector<1x16xf32>
    %94 = vector.broadcast %93 : vector<1x16xf32> to vector<128x16xf32>
    %95 = arith.addf %92, %94 : vector<128x16xf32>
    %96 = vector.shape_cast %95 : vector<128x16xf32> to vector<1x8x16x16xf32>
    %c0_92 = arith.constant 0 : index
    %c0_93 = arith.constant 0 : index
    %c0_94 = arith.constant 0 : index
    %c0_95 = arith.constant 0 : index
    %97 = vector.load %arg10[%c0_92, %c0_93, %c0_94, %c0_95] : memref<1x8x16x16xf32, #tpu.memory_space<vmem>>, vector<1x8x16x16xf32>
    tpu.vector_store %arg10[%c0_92, %c0_93, %c0_94, %c0_95], %96 {strides = array<i32>} : memref<1x8x16x16xf32, #tpu.memory_space<vmem>>, vector<1x8x16x16xf32>,
    return
  }
  func.func @transform_0(%arg0: i32, %arg1: i32) -> (i32, i32, i32, i32) {
    %c0_i32 = arith.constant 0 : i32
    %c0_i32_0 = arith.constant 0 : i32
    %c0_i32_1 = arith.constant 0 : i32
    return %arg0, %arg1, %c0_i32, %c0_i32_0 : i32, i32, i32, i32
  }
  func.func @transform_1(%arg0: i32, %arg1: i32) -> (i32, i32, i32, i32) {
    %c8_i32 = arith.constant 8 : i32
    %0 = arith.muli %arg1, %c8_i32 : i32
    %c1_i32 = arith.constant 1 : i32
    %1 = arith.subi %0, %c1_i32 : i32
    %c0_i32 = arith.constant 0 : i32
    %2 = arith.maxsi %1, %c0_i32 : i32
    %c0_i32_0 = arith.constant 0 : i32
    %c0_i32_1 = arith.constant 0 : i32
    %c0_i32_2 = arith.constant 0 : i32
    return %arg0, %2, %c0_i32_0, %c0_i32_1 : i32, i32, i32, i32
  }
  func.func @transform_2(%arg0: i32, %arg1: i32) -> (i32, i32, i32, i32) {
    %c8_i32 = arith.constant 8 : i32
    %0 = arith.muli %arg1, %c8_i32 : i32
    %c8_i32_0 = arith.constant 8 : i32
    %1 = arith.addi %0, %c8_i32_0 : i32
    %c15_i32 = arith.constant 15 : i32
    %2 = arith.minsi %1, %c15_i32 : i32
    %c0_i32 = arith.constant 0 : i32
    %c0_i32_1 = arith.constant 0 : i32
    %c0_i32_2 = arith.constant 0 : i32
    return %arg0, %2, %c0_i32, %c0_i32_1 : i32, i32, i32, i32
  }
  func.func @transform_3(%arg0: i32, %arg1: i32) -> (i32, i32, i32) {
    %c0_i32 = arith.constant 0 : i32
    %c0_i32_0 = arith.constant 0 : i32
    %c0_i32_1 = arith.constant 0 : i32
    %c0_i32_2 = arith.constant 0 : i32
    return %c0_i32, %c0_i32_0, %c0_i32_1 : i32, i32, i32
  }
  func.func @transform_4(%arg0: i32, %arg1: i32) -> (i32, i32) {
    %c0_i32 = arith.constant 0 : i32
    %c0_i32_0 = arith.constant 0 : i32
    %c0_i32_1 = arith.constant 0 : i32
    return %c0_i32, %c0_i32_0 : i32, i32
  }
  func.func @transform_5(%arg0: i32, %arg1: i32) -> (i32, i32) {
    %c0_i32 = arith.constant 0 : i32
    %c0_i32_0 = arith.constant 0 : i32
    %c0_i32_1 = arith.constant 0 : i32
    return %c0_i32, %c0_i32_0 : i32, i32
  }
  func.func @transform_6(%arg0: i32, %arg1: i32) -> (i32, i32) {
    %c0_i32 = arith.constant 0 : i32
    %c0_i32_0 = arith.constant 0 : i32
    %c0_i32_1 = arith.constant 0 : i32
    return %c0_i32, %c0_i32_0 : i32, i32
  }
  func.func @transform_7(%arg0: i32, %arg1: i32) -> (i32, i32) {
    %c0_i32 = arith.constant 0 : i32
    %c0_i32_0 = arith.constant 0 : i32
    %c0_i32_1 = arith.constant 0 : i32
    return %c0_i32, %c0_i32_0 : i32, i32
  }
  func.func @transform_8(%arg0: i32, %arg1: i32) -> (i32, i32, i32, i32) {
    %c0_i32 = arith.constant 0 : i32
    %c0_i32_0 = arith.constant 0 : i32
    %c0_i32_1 = arith.constant 0 : i32
    return %arg0, %arg1, %c0_i32, %c0_i32_0 : i32, i32, i32, i32
  }
}

</mosaic_0001>

<bundles_post_ra>
// kernel: fcn_head.2
= control target key start
LH: loop header
LB: loop body
LE: loop exit
PB: predicated region body
PF: predicated region fallthrough
CT: control target
= control target key end

     0   :  { %s2015_s15 = smov 0   ;;  %s2017_s16 = smov 0   ;;  %s2486_s0 = inlined_call_operand.vmem [shape: f32[2,16,16,16], index: 0, kind: input, shape index: {}, may-alias: {0,1,2}]   ;;  %s2487_s1 = inlined_call_operand.vmem [shape: f32[2,16,16,16], index: 1, kind: input, shape index: {}, may-alias: {0,1,2}]   ;;  %s2488_s2 = inlined_call_operand.vmem [shape: f32[2,16,16,16], index: 2, kind: input, shape index: {}, may-alias: {0,1,2}]   ;;  %s2489_s3 = inlined_call_operand.vmem [shape: bf16[9,16,8], index: 3, kind: input, shape index: {}]   ;;  %s2490_s4 = inlined_call_operand.vmem [shape: f32[4,2,8], index: 4, kind: output, shape index: {}]  }
   0x1   :  { %s2019_s17 = smov 0   ;;  %s2021_s18 = smov 0  }
   0x2   :  { %s2023_s19 = smov 0  }
   0x3 LB: > { %s23_s20 = sadd.s32 1, %s1979_s17  ;;  %s26_s21 = sadd.s32 1, %s1983_s18  ;;  %s1987_s19 = sphi %s2023_s19, %s14_s19   ;;  %s1983_s18 = sphi %s2021_s18, %s2495_s18   ;;  %s1979_s17 = sphi %s2019_s17, %s2494_s17   ;;  %s1975_s16 = sphi %s2017_s16, %s2493_s16   ;;  %s1971_s15 = sphi %s2015_s15, %s2492_s15  }
   0x4   : > { %p24_p0 = scmp.ge.s32.totalorder %s23_s20, 2  ;;  %p1732_p1 = scmp.ge.s32.totalorder %s1987_s19, 1 }
   0x5   : > { %p250_p2 = scmp.lt.s32.totalorder %s1987_s19, 5 }
   0x6   : > { %s2497_s20 = smov (%p24_p0, %s23_s20), 0  ;;  %s2499_s21 = smov (!%p24_p0, %s26_s21), %s1983_s18 }
   0x7   : > { %p251_p3 = pnand %p1732_p1, %p250_p2  ;;  %p28_p4 = scmp.ge.s32.totalorder %s2499_s21, 2 }
   0x8   : > { %s2053_s24 = sshll.u32 (!%p251_p3), %s1971_s15, 3  ;;  %p309_p5 = scmp.lt.s32.totalorder (!%p251_p3), %s1975_s16, 1 }
   0x9   : > { %s2501_s21 = smov (%p28_p4, %s2499_s21), 0  ;;  %254 = sbr.rel (%p251_p3) target bundleno = 471 (0x1d7), region = 36 }
   0xa   : > { %p311_p6 = scmp.lt.s32.totalorder (!%p251_p3), %s2053_s24, 15  ;;  %s2064_s29 = sadd.s32 (!%p251_p3), 4294967295, %s2053_s24 }
   0xb   : > { %p321_p7 = scmp.gt.s32.totalorder (!%p251_p3), %s2064_s29, 0  ;;  %p362_p8 = scmp.gt.s32.totalorder (!%p251_p3), %s1971_s15, 0 }
   0xc   : > { %p1739_p9 = scmp.lt.s32.totalorder (!%p251_p3), %s2064_s29, 15  ;;  %s337_s22 = sadd.s32 (!%p251_p3), 8, %s2053_s24 }
   0xd   : > { %p2343_p10 = scmp.lt.s32.totalorder (!%p251_p3), %s337_s22, 15  ;;  %p370_p11 = scmp.lt.s32.totalorder (!%p251_p3), %s1971_s15, 1 }
   0xe   : > { %v1885_v0 = vld [vmem:[%s2489_s3 + $0x8] sm:$0xff]  ;;  %v1886_v1 = vld [vmem:[%s2489_s3 + $0x10] sm:$0xff]  ;;  %v1887_v2 = vld [vmem:[%s2489_s3 + $0x18] sm:$0xff]  ;;  %s310_s8 = scalar_select %p309_p5, %s1975_s16, 1  ;;  %vm399_vm0 = vcmask 130048   ;;  %vm378_vm1 = vcmask 122880  }
   0xf   : > { %v1884_v3 = vld [vmem:[%s2489_s3] sm:$0xff]  ;;  %1893 = vmatpush.bf16.msra.mxu1 %v1885_v0  ;;  %1894 = vmatpush.bf16.msra.mxu2 %v1885_v0  ;;  %s312_s9 = scalar_select %p311_p6, %s2053_s24, 15  ;;  %v1890_v30 = vld [vmem:[%s2489_s3 + $0x30] sm:$0xff]  ;;  %v1891_v31 = vld [vmem:[%s2489_s3 + $0x38] sm:$0xff]  ;;  %v1989_v32 = vmov 0.0   ;;  %vm1504_vm2 = vcmask 64512  }
  0x10   : > { %v1888_v4 = vld [vmem:[%s2489_s3 + $0x20] sm:$0xff]  ;;  %1895 = vmatpush.bf16.msra.mxu3 %v1885_v0  ;;  %s2074_s10 = sshll.u32 %s310_s8, 5  ;;  %528 = vmatpush.bf16.msra.mxu0 %v1885_v0  ;;  %s2503_s29 = smov (!%p321_p7, %s2064_s29), 0  ;;  %379 = vst.msk [vmem:[#allocation2] sm:$0x1] %vm378_vm1, %v1989_v32  ;;  %v1889_v38 = vld [vmem:[%s2489_s3 + $0x28] sm:$0xff] }
  0x11   : > { %s1734_s11 = sshll.u32 %s312_s9, 1  ;;  %s2505_s29 = smov (!%p1739_p9, %s2503_s29), 15  ;;  %380 = vst.msk [vmem:[#allocation2 + $0x18] sm:$0x1] %vm378_vm1, %v1989_v32  ;;  %v1892_v39 = vld [vmem:[%s2489_s3 + $0x40] sm:$0xff]  ;;  %vm1542_vm3 = vcmask 57344  }
  0x12   : > { %s315_s12 = sadd.s32 %s2074_s10, %s1734_s11  ;;  %s1744_s25 = sshll.u32 %s2505_s29, 1  ;;  %381 = vst.msk [vmem:[#allocation2 + $0x30] sm:$0x1] %vm378_vm1, %v1989_v32 }
  0x13   : > { %713 = vmatpush.bf16.msrb.mxu2 %v1886_v1  ;;  %607 = vmatpush.bf16.msrb.mxu1 %v1884_v3  ;;  %s1736_s13 = sshll.u32 %s315_s12, 3  ;;  %s329_s26 = sadd.s32 %s1744_s25, %s2074_s10  ;;  %382 = vst.msk [vmem:[#allocation2 + $0x48] sm:$0x1] %vm378_vm1, %v1989_v32 }
  0x14   : > { %835 = vmatpush.bf16.msrb.mxu3 %v1887_v2  ;;  %957 = vmatpush.bf16.msrb.mxu0 %v1888_v4  ;;  %s2083_s23 = scalar_lea.vmem %s2486_s0, %s1736_s13  ;;  %s1746_s27 = sshll.u32 %s329_s26, 3  ;;  %383 = vst.msk [vmem:[#allocation2 + $0x60] sm:$0x1] %vm378_vm1, %v1989_v32 }
  0x15   : > { %v404_v5 = vld [vmem:[%s2083_s23 + $0x10] sm:$0xff]  ;;  %v405_v6 = vld [vmem:[%s2083_s23 + $0x18] sm:$0xff]  ;;  %v406_v11 = vld [vmem:[%s2083_s23 + $0x20] sm:$0xff]  ;;  %s331_s5 = scalar_lea.vmem %s2487_s1, %s1746_s27  ;;  %384 = vst.msk [vmem:[#allocation2 + $0x78] sm:$0x1] %vm378_vm1, %v1989_v32  ;;  %s2507_s22 = smov (!%p2343_p10, %s337_s22), 15 }
  0x16   : > { %v408_v7 = vld [vmem:[%s2083_s23 + $0x30] sm:$0xff]  ;;  %421 = vst.msk [vmem:[#allocation2 + $0x31] sm:$0xff] %vm399_vm0, %v404_v5  ;;  %v409_v8 = vld [vmem:[%s2083_s23 + $0x38] sm:$0xff]  ;;  %v407_v12 = vld [vmem:[%s2083_s23 + $0x28] sm:$0xff]  ;;  %s1938_s29 = scalar_select %p362_p8, 255, 0 }
  0x17   : > { %422 = vst.msk [vmem:[#allocation2 + $0x39] sm:$0xff] %vm399_vm0, %v405_v6  ;;  %v412_v9 = vld [vmem:[%s2083_s23 + $0x50] sm:$0xff]  ;;  %v413_v10 = vld [vmem:[%s2083_s23 + $0x58] sm:$0xff]  ;;  %v410_v13 = vld [vmem:[%s2083_s23 + $0x40] sm:$0xff]  ;;  %s2509_s22 = smov (!%p2343_p10, %s2507_s22), 15 }
  0x18   : > { %425 = vst.msk [vmem:[#allocation2 + $0x61] sm:$0xff] %vm399_vm0, %v408_v7  ;;  %v411_v14 = vld [vmem:[%s2083_s23 + $0x48] sm:$0xff]  ;;  %v1939_v19 = vld [vmem:[%s331_s5] sm:%s1938_s29]  ;;  %s1751_s24 = sshll.u32 %s2509_s22, 1 }
  0x19   : > { %426 = vst.msk [vmem:[#allocation2 + $0x69] sm:$0xff] %vm399_vm0, %v409_v8  ;;  %v414_v20 = vld [vmem:[%s2083_s23 + $0x60] sm:$0xff]  ;;  %v1942_v22 = vld [vmem:[%s331_s5 + $0x8] sm:%s1938_s29]  ;;  %s346_s25 = sadd.s32 %s1751_s24, %s2074_s10  ;;  %s1754_s10 = sshll.u32 %s1975_s16, 1 }
  0x1a   : > { %429 = vst.msk [vmem:[#allocation2 + $0x91] sm:$0xff] %vm399_vm0, %v412_v9  ;;  %v415_v23 = vld [vmem:[%s2083_s23 + $0x68] sm:$0xff]  ;;  %v402_v26 = vld [vmem:[%s2083_s23] sm:$0xff]  ;;  %s1753_s26 = sshll.u32 %s346_s25, 3  ;;  %s354_s29 = sadd.s32 %s1971_s15, %s1754_s10 }
  0x1b   : > { %430 = vst.msk [vmem:[#allocation2 + $0x99] sm:$0xff] %vm399_vm0, %v413_v10  ;;  %v403_v28 = vld [vmem:[%s2083_s23 + $0x8] sm:$0xff]  ;;  %s1944_s27 = scalar_select %p370_p11, 255, 0 }
  0x1c   : > { %423 = vst.msk [vmem:[#allocation2 + $0x49] sm:$0xff] %vm399_vm0, %v406_v11  ;;  %s348_s5 = scalar_lea.vmem %s2488_s2, %s1753_s26  ;;  %p355_p12 = scmp.lt.s32.totalorder %s354_s29, 3 }
  0x1d   : > { %v468_v15 = vld [vmem:[#allocation2 + $0x31] sm:$0xff]  ;;  %424 = vst.msk [vmem:[#allocation2 + $0x51] sm:$0xff] %vm399_vm0, %v407_v12 }
  0x1e   : > { %v469_v16 = vld [vmem:[#allocation2 + $0x39] sm:$0xff]  ;;  %427 = vst.msk [vmem:[#allocation2 + $0x79] sm:$0xff] %vm399_vm0, %v410_v13  ;;  %v773_v61 = vld [vmem:[#allocation2 + $0x30] sm:$0xff]  ;;  %s2511_s29 = smov (!%p355_p12, %s354_s29), 3 }
  0x1f   : > { %v2111_v17 = vpack.c.bf16 %v469_v16, %v468_v15  ;;  %v472_v18 = vld [vmem:[#allocation2 + $0x61] sm:$0xff]  ;;  %428 = vst.msk [vmem:[#allocation2 + $0x81] sm:$0xff] %vm399_vm0, %v411_v14  ;;  %v774_v62 = vld [vmem:[#allocation2 + $0x38] sm:$0xff]  ;;  %s1755_s16 = sshll.u32 %s2511_s29, 1 }
  0x20   : > { %v473_v21 = vld [vmem:[#allocation2 + $0x69] sm:$0xff]  ;;  %400 = vst.msk [vmem:[#allocation2 + $0x1] sm:$0xff] %vm399_vm0, %v1939_v19  ;;  %v2187_v0 = vpack.c.bf16 %v774_v62, %v773_v61  ;;  %v653_v1 = vld [vmem:[#allocation2 + $0x32] sm:$0xff]  ;;  %v777_v9 = vld [vmem:[#allocation2 + $0x60] sm:$0xff]  ;;  %s358_s7 = scalar_lea.vmem %s2490_s4, %s1755_s16 }
  0x21   : > { %1764 = vmatmul.msk.bf16.vlgmr.msra.gmra.mxu1 %vm399_vm0, %v2111_v17  ;;  %v2119_v24 = vpack.c.bf16 %v473_v21, %v472_v18  ;;  %v476_v25 = vld [vmem:[#allocation2 + $0x91] sm:$0xff]  ;;  %401 = vst.msk [vmem:[#allocation2 + $0x9] sm:$0xff] %vm399_vm0, %v1942_v22  ;;  %v778_v10 = vld [vmem:[#allocation2 + $0x68] sm:$0xff] }
  0x22   : > { %v477_v27 = vld [vmem:[#allocation2 + $0x99] sm:$0xff]  ;;  %431 = vst.msk [vmem:[#allocation2 + $0xa9] sm:$0xff] %vm399_vm0, %v414_v20  ;;  %1079 = vmatpush.bf16.msra.mxu1 %v1889_v38  ;;  %v2211_v12 = vpack.c.bf16 %v778_v10, %v777_v9  ;;  %v657_v13 = vld [vmem:[#allocation2 + $0x62] sm:$0xff]  ;;  %v416_v22 = vld [vmem:[%s2083_s23 + $0x70] sm:$0xff] }
  0x23   : > { %1766 = vmatmul.msk.bf16.vlgmr.msra.gmra.mxu2 %vm399_vm0, %v2119_v24  ;;  %v2127_v29 = vpack.c.bf16 %v477_v27, %v476_v25  ;;  %432 = vst.msk [vmem:[#allocation2 + $0xb1] sm:$0xff] %vm399_vm0, %v415_v23  ;;  %v470_v36 = vld [vmem:[#allocation2 + $0x49] sm:$0xff]  ;;  %v417_v23 = vld [vmem:[%s2083_s23 + $0x78] sm:$0xff] }
  0x24   : > { %419 = vst.msk [vmem:[#allocation2 + $0x19] sm:$0xff] %vm399_vm0, %v402_v26  ;;  %1202 = vmatpush.bf16.msra.mxu2 %v1890_v30  ;;  %v471_v37 = vld [vmem:[#allocation2 + $0x51] sm:$0xff]  ;;  %v775_v3 = vld [vmem:[#allocation2 + $0x48] sm:$0xff] }
  0x25   : > { %1768 = vmatmul.msk.bf16.vlgmr.msra.gmra.mxu3 %vm399_vm0, %v2127_v29  ;;  %420 = vst.msk [vmem:[#allocation2 + $0x21] sm:$0xff] %vm399_vm0, %v403_v28  ;;  %v474_v40 = vld [vmem:[#allocation2 + $0x79] sm:$0xff]  ;;  %v2154_v42 = vpack.c.bf16 %v471_v37, %v470_v36  ;;  %v776_v4 = vld [vmem:[#allocation2 + $0x50] sm:$0xff] }
  0x26   : > { %1324 = vmatpush.bf16.msra.mxu3 %v1891_v31  ;;  %v475_v41 = vld [vmem:[#allocation2 + $0x81] sm:$0xff]  ;;  %385 = vst.msk [vmem:[#allocation2 + $0x90] sm:$0x1] %vm378_vm1, %v1989_v32  ;;  %v2199_v6 = vpack.c.bf16 %v776_v4, %v775_v3  ;;  %v655_v7 = vld [vmem:[#allocation2 + $0x4a] sm:$0xff]  ;;  %v779_v15 = vld [vmem:[#allocation2 + $0x78] sm:$0xff] }
  0x27   : > { %v464_v33 = vld [vmem:[#allocation2 + $0x1] sm:$0xff]  ;;  %386 = vst.msk [vmem:[#allocation2 + $0xa8] sm:$0x1] %vm378_vm1, %v1989_v32  ;;  %v2158_v45 = vpack.c.bf16 %v475_v41, %v474_v40  ;;  %v782_v26 = vld [vmem:[#allocation2 + $0x98] sm:$0xff] }
  0x28   : > { %v465_v34 = vld [vmem:[#allocation2 + $0x9] sm:$0xff]  ;;  %387 = vst.msk [vmem:[#allocation2 + $0xc0] sm:$0x1] %vm378_vm1, %v1989_v32  ;;  %v438_v50 = vld [vmem:[#allocation2] sm:$0xff]  ;;  %v661_v30 = vld [vmem:[#allocation2 + $0x92] sm:$0xff] }
  0x29   : > { %v480_v35 = vpack.c.bf16 %v465_v34, %v464_v33  ;;  %v478_v43 = vld [vmem:[#allocation2 + $0xa9] sm:$0xff]  ;;  %388 = vst.msk [vmem:[#allocation2 + $0xd8] sm:$0x1] %vm378_vm1, %v1989_v32  ;;  %v780_v16 = vld [vmem:[#allocation2 + $0x80] sm:$0xff] }
  0x2a   : > { %v479_v44 = vld [vmem:[#allocation2 + $0xb1] sm:$0xff]  ;;  %389 = vst.msk [vmem:[#allocation2 + $0x11] sm:$0x1] %vm378_vm1, %v1989_v32  ;;  %v439_v51 = vld [vmem:[#allocation2 + $0x8] sm:$0xff]  ;;  %v2223_v19 = vpack.c.bf16 %v780_v16, %v779_v15  ;;  %v659_v20 = vld [vmem:[#allocation2 + $0x7a] sm:$0xff] }
  0x2b   : > { %1762 = vmatmul.msk.bf16.vlgmr.msra.gmra.mxu0 %vm399_vm0, %v480_v35  ;;  %v2164_v46 = vpack.c.bf16 %v479_v44, %v478_v43  ;;  %390 = vst.msk [vmem:[#allocation2 + $0x29] sm:$0x1] %vm378_vm1, %v1989_v32  ;;  %v466_v47 = vld [vmem:[#allocation2 + $0x19] sm:$0xff]  ;;  %v649_v52 = vld [vmem:[#allocation2 + $0x2] sm:$0xff]  ;;  %v454_v54 = vpack.c.bf16 %v439_v51, %v438_v50  ;;  %v784_v34 = vld [vmem:[#allocation2 + $0xb0] sm:$0xff] }
  0x2c   : > { %1446 = vmatpush.bf16.msra.mxu0 %v1892_v39  ;;  %391 = vst.msk [vmem:[#allocation2 + $0x41] sm:$0x1] %vm378_vm1, %v1989_v32  ;;  %v467_v48 = vld [vmem:[#allocation2 + $0x21] sm:$0xff]  ;;  %v771_v55 = vld [vmem:[#allocation2 + $0x18] sm:$0xff]  ;;  %v663_v41 = vld [vmem:[#allocation2 + $0xaa] sm:$0xff] }
  0x2d   : > { %392 = vst.msk [vmem:[#allocation2 + $0x59] sm:$0x1] %vm378_vm1, %v1989_v32  ;;  %v481_v49 = vpack.c.bf16 %v467_v48, %v466_v47  ;;  %v772_v56 = vld [vmem:[#allocation2 + $0x20] sm:$0xff]  ;;  %v781_v25 = vld [vmem:[#allocation2 + $0x90] sm:$0xff] }
  0x2e   : > { %393 = vst.msk [vmem:[#allocation2 + $0x71] sm:$0x1] %vm378_vm1, %v1989_v32  ;;  %v787_v58 = vpack.c.bf16 %v772_v56, %v771_v55  ;;  %v651_v59 = vld [vmem:[#allocation2 + $0x1a] sm:$0xff]  ;;  %v2239_v28 = vpack.c.bf16 %v782_v26, %v781_v25  ;;  %v783_v33 = vld [vmem:[#allocation2 + $0xa8] sm:$0xff] }
  0x2f   : > { %394 = vst.msk [vmem:[#allocation2 + $0x89] sm:$0x1] %vm378_vm1, %v1989_v32  ;;  %v2253_v36 = vpack.c.bf16 %v784_v34, %v783_v33 }
  0x30   : > { %395 = vst.msk [vmem:[#allocation2 + $0xa1] sm:$0x1] %vm378_vm1, %v1989_v32 }
  0x31   : > { %1765 = vmatmul.msk.bf16.gmra.mxu1 %vm399_vm0, %v2154_v42  ;;  %396 = vst.msk [vmem:[#allocation2 + $0xb9] sm:$0x1] %vm378_vm1, %v1989_v32  ;;  %v650_v53 = vld [vmem:[#allocation2 + $0xa] sm:$0xff] }
  0x32   : > { %397 = vst.msk [vmem:[#allocation2 + $0xd1] sm:$0x1] %vm378_vm1, %v1989_v32  ;;  %v665_v57 = vpack.c.bf16 %v650_v53, %v649_v52  ;;  %v652_v60 = vld [vmem:[#allocation2 + $0x22] sm:$0xff] }
  0x33   : > { %1767 = vmatmul.msk.bf16.gmra.mxu2 %vm399_vm0, %v2158_v45  ;;  %398 = vst.msk [vmem:[#allocation2 + $0xe9] sm:$0x1] %vm378_vm1, %v1989_v32  ;;  %v2184_v63 = vpack.c.bf16 %v652_v60, %v651_v59  ;;  %v654_v2 = vld [vmem:[#allocation2 + $0x3a] sm:$0xff] }
  0x34   : > { %v2195_v5 = vpack.c.bf16 %v654_v2, %v653_v1  ;;  %v656_v8 = vld [vmem:[#allocation2 + $0x52] sm:$0xff]  ;;  %433 = vst.msk [vmem:[#allocation2 + $0xc1] sm:$0xff] %vm399_vm0, %v416_v22 }
  0x35   : > { %1769 = vmatmul.msk.bf16.gmra.mxu3 %vm399_vm0, %v2164_v46  ;;  %v2207_v11 = vpack.c.bf16 %v656_v8, %v655_v7  ;;  %v658_v14 = vld [vmem:[#allocation2 + $0x6a] sm:$0xff]  ;;  %434 = vst.msk [vmem:[#allocation2 + $0xc9] sm:$0xff] %vm399_vm0, %v417_v23 }
  0x36   : > { %v2219_v18 = vpack.c.bf16 %v658_v14, %v657_v13  ;;  %v660_v21 = vld [vmem:[#allocation2 + $0x82] sm:$0xff] }
  0x37   : > { %v2234_v27 = vpack.c.bf16 %v660_v21, %v659_v20  ;;  %v662_v31 = vld [vmem:[#allocation2 + $0x9a] sm:$0xff] }
  0x38   : > { %v2249_v35 = vpack.c.bf16 %v662_v31, %v661_v30  ;;  %v664_v43 = vld [vmem:[#allocation2 + $0xb2] sm:$0xff] }
  0x39   : > { %v2271_v50 = vpack.c.bf16 %v664_v43, %v663_v41 }
  0x3b   : > { %1763 = vmatmul.msk.bf16.gmra.mxu0 %vm399_vm0, %v481_v49  ;;  %v785_v48 = vld [vmem:[#allocation2 + $0xc0] sm:$0xff] }
  0x3c   : > { %v908_v55 = vld [vmem:[#allocation2 + $0xc9] sm:$0xff] }
  0x41   : > { %1774 = vmatmul.msk.bf16.vlgmr.msrb.gmra.mxu1 %vm399_vm0, %v454_v54  ;;  %v907_v54 = vld [vmem:[#allocation2 + $0xc1] sm:$0xff] }
  0x43   : > { %1788 = vmatmul.msk.bf16.vlgmr.msrb.gmra.mxu2 %vm399_vm0, %v665_v57 }
  0x45   : > { %1802 = vmatmul.msk.bf16.vlgmr.msrb.gmra.mxu3 %vm399_vm0, %v787_v58 }
  0x4b   : > { %1816 = vmatmul.msk.bf16.vlgmr.msrb.gmra.mxu0 %vm399_vm0, %v481_v49  ;;  %v786_v49 = vld [vmem:[#allocation2 + $0xc8] sm:$0xff] }
  0x4c   : > { %v2277_v53 = vpack.c.bf16 %v786_v49, %v785_v48 }
  0x51   : > { %1775 = vmatmul.msk.bf16.gmra.mxu1 %vm399_vm0, %v787_v58  ;;  %v2287_v58 = vpack.c.bf16 %v908_v55, %v907_v54 }
  0x53   : > { %1789 = vmatmul.msk.bf16.gmra.mxu2 %vm399_vm0, %v2184_v63 }
  0x55   : > { %1803 = vmatmul.msk.bf16.gmra.mxu3 %vm399_vm0, %v2187_v0 }
  0x5b   : > { %1817 = vmatmul.msk.bf16.gmra.mxu0 %vm399_vm0, %v2111_v17 }
  0x61   : > { %1776 = vmatmul.msk.bf16.gmra.mxu1 %vm399_vm0, %v2187_v0 }
  0x63   : > { %1790 = vmatmul.msk.bf16.gmra.mxu2 %vm399_vm0, %v2195_v5 }
  0x65   : > { %1804 = vmatmul.msk.bf16.gmra.mxu3 %vm399_vm0, %v2199_v6 }
  0x6b   : > { %1818 = vmatmul.msk.bf16.gmra.mxu0 %vm399_vm0, %v2154_v42 }
  0x71   : > { %1777 = vmatmul.msk.bf16.gmra.mxu1 %vm399_vm0, %v2199_v6 }
  0x73   : > { %1791 = vmatmul.msk.bf16.gmra.mxu2 %vm399_vm0, %v2207_v11 }
  0x75   : > { %1805 = vmatmul.msk.bf16.gmra.mxu3 %vm399_vm0, %v2211_v12 }
  0x7b   : > { %1819 = vmatmul.msk.bf16.gmra.mxu0 %vm399_vm0, %v2119_v24 }
  0x81   : > { %1778 = vmatmul.msk.bf16.gmra.mxu1 %vm399_vm0, %v2211_v12 }
  0x83   : > { %1792 = vmatmul.msk.bf16.gmra.mxu2 %vm399_vm0, %v2219_v18 }
  0x85   : > { %1806 = vmatmul.msk.bf16.gmra.mxu3 %vm399_vm0, %v2223_v19 }
  0x8b   : > { %1820 = vmatmul.msk.bf16.gmra.mxu0 %vm399_vm0, %v2158_v45 }
  0x91   : > { %1779 = vmatmul.msk.bf16.gmra.mxu1 %vm399_vm0, %v2223_v19 }
  0x93   : > { %1793 = vmatmul.msk.bf16.gmra.mxu2 %vm399_vm0, %v2234_v27 }
  0x95   : > { %1807 = vmatmul.msk.bf16.gmra.mxu3 %vm399_vm0, %v2239_v28 }
  0x9b   : > { %1821 = vmatmul.msk.bf16.gmra.mxu0 %vm399_vm0, %v2127_v29 }
  0x9e   : > { %v2247_v32 = vpop.f32.mrf.mxu1 }
  0xa1   : > { %1780 = vmatmul.msk.bf16.gmra.mxu1 %vm399_vm0, %v2239_v28 }
  0xa3   : > { %1794 = vmatmul.msk.bf16.gmra.mxu2 %vm399_vm0, %v2249_v35 }
  0xa5   : > { %1808 = vmatmul.msk.bf16.gmra.mxu3 %vm399_vm0, %v2253_v36 }
  0xa6   : > { %v2259_v37 = vpop.f32.mrf.mxu2  ;;  %v2261_v38 = vpop.f32.mrf.mxu1 }
  0xa8   : > { %v530_v39 = vpop.f32.mrf.mxu0  ;;  %v2263_v40 = vpop.f32.mrf.mxu3 }
  0xab   : > { %1822 = vmatmul.msk.bf16.gmra.mxu0 %vm399_vm0, %v2164_v46 }
  0xae   : > { %v2267_v44 = vpop.f32.mrf.mxu2  ;;  %v2269_v47 = vpop.f32.mrf.mxu1 }
  0xb0   : > { %v532_v51 = vpop.f32.mrf.mxu0  ;;  %v2273_v52 = vpop.f32.mrf.mxu3 }
  0xb1   : > { %1781 = vmatmul.msk.bf16.gmra.mxu1 %vm399_vm0, %v2253_v36 }
  0xb3   : > { %1795 = vmatmul.msk.bf16.gmra.mxu2 %vm399_vm0, %v2271_v50 }
  0xb5   : > { %1809 = vmatmul.msk.bf16.gmra.mxu3 %vm399_vm0, %v2277_v53 }
  0xb6   : > { %v2283_v56 = vpop.f32.mrf.mxu2  ;;  %v2285_v57 = vpop.f32.mrf.mxu1 }
  0xb8   : > { %v535_v59 = vpop.f32.mrf.mxu0  ;;  %v2289_v60 = vpop.f32.mrf.mxu3 }
  0xbb   : > { %1823 = vmatmul.msk.bf16.gmra.mxu0 %vm399_vm0, %v2287_v58 }
  0xbe   : > { %v2293_v61 = vpop.f32.mrf.mxu2  ;;  %v609_v62 = vpop.f32.mrf.mxu1 }
  0xbf   : > { %v610_v1 = vadd.f32 %v609_v62, %v530_v39 }
  0xc0   : > { %v537_v2 = vpop.f32.mrf.mxu0  ;;  %v2295_v3 = vpop.f32.mrf.mxu3 }
  0xc1   : > { %1830 = vmatmul.msk.bf16.vlgmr.msra.gmra.mxu1 %vm399_vm0, %v2184_v63 }
  0xc3   : > { %1844 = vmatmul.msk.bf16.vlgmr.msra.gmra.mxu2 %vm399_vm0, %v2187_v0 }
  0xc5   : > { %1858 = vmatmul.msk.bf16.vlgmr.msra.gmra.mxu3 %vm399_vm0, %v2111_v17 }
  0xc6   : > { %v715_v4 = vpop.f32.mrf.mxu2  ;;  %v611_v7 = vpop.f32.mrf.mxu1 }
  0xc7   : > { %v755_v8 = vadd.f32 %v715_v4, %v610_v1  ;;  %v612_v9 = vadd.f32 %v611_v7, %v532_v51 }
  0xc8   : > { %v959_v10 = vpop.f32.mrf.mxu0  ;;  %v837_v13 = vpop.f32.mrf.mxu3 }
  0xc9   : > { %v877_v14 = vadd.f32 %v837_v13, %v755_v8 }
  0xcb   : > { %1872 = vmatmul.msk.bf16.vlgmr.msra.gmra.mxu0 %vm399_vm0, %v2195_v5  ;;  %v2305_v15 = vadd.f32 %v959_v10, %v877_v14 }
  0xce   : > { %v717_v16 = vpop.f32.mrf.mxu2  ;;  %v614_v63 = vpop.f32.mrf.mxu1 }
  0xcf   : > { %v756_v20 = vadd.f32 %v717_v16, %v612_v9  ;;  %v615_v21 = vadd.f32 %v614_v63, %v535_v59 }
  0xd0   : > { %v961_v0 = vpop.f32.mrf.mxu0  ;;  %v839_v22 = vpop.f32.mrf.mxu3 }
  0xd1   : > { %v878_v23 = vadd.f32 %v839_v22, %v756_v20  ;;  %1831 = vmatmul.msk.bf16.gmra.mxu1 %vm399_vm0, %v2195_v5 }
  0xd3   : > { %1845 = vmatmul.msk.bf16.gmra.mxu2 %vm399_vm0, %v2199_v6  ;;  %v2311_v17 = vadd.f32 %v961_v0, %v878_v23 }
  0xd5   : > { %1859 = vmatmul.msk.bf16.gmra.mxu3 %vm399_vm0, %v2154_v42 }
  0xd6   : > { %v720_v25 = vpop.f32.mrf.mxu2  ;;  %v616_v26 = vpop.f32.mrf.mxu1 }
  0xd7   : > { %v757_v30 = vadd.f32 %v720_v25, %v615_v21  ;;  %v617_v31 = vadd.f32 %v616_v26, %v537_v2 }
  0xd8   : > { %v964_v33 = vpop.f32.mrf.mxu0  ;;  %v842_v34 = vpop.f32.mrf.mxu3 }
  0xd9   : > { %v879_v39 = vadd.f32 %v842_v34, %v757_v30 }
  0xdb   : > { %1873 = vmatmul.msk.bf16.gmra.mxu0 %vm399_vm0, %v2207_v11  ;;  %v2317_v41 = vadd.f32 %v964_v33, %v879_v39 }
  0xde   : > { %v722_v5 = vpop.f32.mrf.mxu2  ;;  %v619_v43 = vpop.f32.mrf.mxu1 }
  0xdf   : > { %v758_v6 = vadd.f32 %v722_v5, %v617_v31  ;;  %v620_v48 = vadd.f32 %v619_v43, %v2247_v32  ;;  %v1948_v43 = vld [vmem:[%s348_s5 + $0x8] sm:%s1944_s27] }
  0xe0   : > { %v966_v49 = vpop.f32.mrf.mxu0  ;;  %v844_v51 = vpop.f32.mrf.mxu3  ;;  %437 = vst.msk [vmem:[#allocation2 + $0xe1] sm:$0xff] %vm399_vm0, %v1948_v43 }
  0xe1   : > { %v880_v42 = vadd.f32 %v844_v51, %v758_v6  ;;  %1832 = vmatmul.msk.bf16.gmra.mxu1 %vm399_vm0, %v2207_v11 }
  0xe3   : > { %1846 = vmatmul.msk.bf16.gmra.mxu2 %vm399_vm0, %v2211_v12  ;;  %v2324_v54 = vadd.f32 %v966_v49, %v880_v42 }
  0xe5   : > { %1860 = vmatmul.msk.bf16.gmra.mxu3 %vm399_vm0, %v2119_v24 }
  0xe6   : > { %v725_v55 = vpop.f32.mrf.mxu2  ;;  %v621_v59 = vpop.f32.mrf.mxu1 }
  0xe7   : > { %v759_v62 = vadd.f32 %v725_v55, %v620_v48  ;;  %v622_v32 = vadd.f32 %v621_v59, %v2261_v38 }
  0xe8   : > { %v969_v1 = vpop.f32.mrf.mxu0  ;;  %v847_v2 = vpop.f32.mrf.mxu3 }
  0xe9   : > { %v881_v4 = vadd.f32 %v847_v2, %v759_v62 }
  0xeb   : > { %1874 = vmatmul.msk.bf16.gmra.mxu0 %vm399_vm0, %v2219_v18  ;;  %v2331_v11 = vadd.f32 %v969_v1, %v881_v4 }
  0xee   : > { %v727_v12 = vpop.f32.mrf.mxu2  ;;  %v624_v7 = vpop.f32.mrf.mxu1 }
  0xef   : > { %v760_v8 = vadd.f32 %v727_v12, %v622_v32  ;;  %v625_v9 = vadd.f32 %v624_v7, %v2269_v47 }
  0xf0   : > { %v971_v24 = vpop.f32.mrf.mxu0  ;;  %v849_v10 = vpop.f32.mrf.mxu3 }
  0xf1   : > { %v882_v13 = vadd.f32 %v849_v10, %v760_v8  ;;  %1833 = vmatmul.msk.bf16.gmra.mxu1 %vm399_vm0, %v2219_v18 }
  0xf3   : > { %1847 = vmatmul.msk.bf16.gmra.mxu2 %vm399_vm0, %v2223_v19  ;;  %v2339_v38 = vadd.f32 %v971_v24, %v882_v13  ;;  %v1394_v13 = vld [vmem:[#allocation2 + $0xc2] sm:$0xff] }
  0xf5   : > { %1861 = vmatmul.msk.bf16.gmra.mxu3 %vm399_vm0, %v2158_v45 }
  0xf6   : > { %v730_v47 = vpop.f32.mrf.mxu2  ;;  %v626_v14 = vpop.f32.mrf.mxu1 }
  0xf7   : > { %v761_v16 = vadd.f32 %v730_v47, %v625_v9  ;;  %v627_v18 = vadd.f32 %v626_v14, %v2285_v57  ;;  %v1395_v47 = vld [vmem:[#allocation2 + $0xca] sm:$0xff] }
  0xf8   : > { %v974_v63 = vpop.f32.mrf.mxu0  ;;  %v852_v20 = vpop.f32.mrf.mxu3 }
  0xf9   : > { %v883_v21 = vadd.f32 %v852_v20, %v761_v16 }
  0xfb   : > { %1875 = vmatmul.msk.bf16.gmra.mxu0 %vm399_vm0, %v2234_v27  ;;  %v2352_v45 = vadd.f32 %v974_v63, %v883_v21  ;;  %v1404_v63 = vpack.c.bf16 %v1395_v47, %v1394_v13 }
  0xfe   : > { %v732_v19 = vpop.f32.mrf.mxu2  ;;  %v629_v0 = vpop.f32.mrf.mxu1 }
  0xff   : > { %v762_v22 = vadd.f32 %v732_v19, %v627_v18  ;;  %v630_v30 = vadd.f32 %v629_v0, %v2259_v37  ;;  %v1945_v37 = vld [vmem:[%s348_s5] sm:%s1944_s27] }
 0x100   : > { %v976_v23 = vpop.f32.mrf.mxu0  ;;  %v854_v57 = vpop.f32.mrf.mxu3  ;;  %436 = vst.msk [vmem:[#allocation2 + $0xd9] sm:$0xff] %vm399_vm0, %v1945_v37 }
 0x101   : > { %v884_v25 = vadd.f32 %v854_v57, %v762_v22  ;;  %1834 = vmatmul.msk.bf16.gmra.mxu1 %vm399_vm0, %v2234_v27 }
 0x103   : > { %1848 = vmatmul.msk.bf16.gmra.mxu2 %vm399_vm0, %v2239_v28  ;;  %v2361_v26 = vadd.f32 %v976_v23, %v884_v25  ;;  %v1275_v25 = vld [vmem:[#allocation2 + $0xe1] sm:$0xff] }
 0x105   : > { %1862 = vmatmul.msk.bf16.gmra.mxu3 %vm399_vm0, %v2127_v29 }
 0x106   : > { %v735_v31 = vpop.f32.mrf.mxu2  ;;  %v631_v33 = vpop.f32.mrf.mxu1 }
 0x107   : > { %v763_v34 = vadd.f32 %v735_v31, %v630_v30  ;;  %v632_v29 = vadd.f32 %v631_v33, %v2267_v44  ;;  %v1153_v0 = vld [vmem:[#allocation2 + $0xe0] sm:$0xff] }
 0x108   : > { %v979_v39 = vpop.f32.mrf.mxu0  ;;  %v857_v5 = vpop.f32.mrf.mxu3  ;;  %v1274_v57 = vld [vmem:[#allocation2 + $0xd9] sm:$0xff] }
 0x109   : > { %v885_v27 = vadd.f32 %v857_v5, %v763_v34 }
 0x10b   : > { %1876 = vmatmul.msk.bf16.gmra.mxu0 %vm399_vm0, %v2249_v35  ;;  %v2374_v28 = vadd.f32 %v979_v39, %v885_v27  ;;  %v1283_v39 = vpack.c.bf16 %v1275_v25, %v1274_v57  ;;  %v1396_v27 = vld [vmem:[#allocation2 + $0xda] sm:$0xff] }
 0x10e   : > { %v737_v6 = vpop.f32.mrf.mxu2  ;;  %v634_v48 = vpop.f32.mrf.mxu1 }
 0x10f   : > { %v764_v49 = vadd.f32 %v737_v6, %v632_v29  ;;  %v635_v44 = vadd.f32 %v634_v48, %v2283_v56  ;;  %v1397_v29 = vld [vmem:[#allocation2 + $0xe2] sm:$0xff] }
 0x110   : > { %v981_v51 = vpop.f32.mrf.mxu0  ;;  %v859_v42 = vpop.f32.mrf.mxu3  ;;  %v1405_v48 = vpack.c.bf16 %v1397_v29, %v1396_v27 }
 0x111   : > { %v886_v55 = vadd.f32 %v859_v42, %v764_v49  ;;  %1835 = vmatmul.msk.bf16.gmra.mxu1 %vm399_vm0, %v2249_v35 }
 0x113   : > { %1849 = vmatmul.msk.bf16.gmra.mxu2 %vm399_vm0, %v2253_v36  ;;  %v2383_v59 = vadd.f32 %v981_v51, %v886_v55 }
 0x115   : > { %1863 = vmatmul.msk.bf16.gmra.mxu3 %vm399_vm0, %v2164_v46 }
 0x116   : > { %v740_v62 = vpop.f32.mrf.mxu2  ;;  %v636_v32 = vpop.f32.mrf.mxu1 }
 0x117   : > { %v765_v1 = vadd.f32 %v740_v62, %v635_v44  ;;  %v637_v36 = vadd.f32 %v636_v32, %v2293_v61 }
 0x118   : > { %v984_v2 = vpop.f32.mrf.mxu0  ;;  %v862_v4 = vpop.f32.mrf.mxu3 }
 0x119   : > { %v887_v12 = vadd.f32 %v862_v4, %v765_v1 }
 0x11b   : > { %1877 = vmatmul.msk.bf16.gmra.mxu0 %vm399_vm0, %v2271_v50  ;;  %v2390_v35 = vadd.f32 %v984_v2, %v887_v12 }
 0x11e   : > { %v742_v7 = vpop.f32.mrf.mxu2  ;;  %v639_v8 = vpop.f32.mrf.mxu1 }
 0x11f   : > { %v766_v9 = vadd.f32 %v742_v7, %v637_v36  ;;  %v640_v14 = vadd.f32 %v639_v8, %v2263_v40 }
 0x120   : > { %v986_v56 = vpop.f32.mrf.mxu0  ;;  %v864_v24 = vpop.f32.mrf.mxu3 }
 0x121   : > { %v888_v10 = vadd.f32 %v864_v24, %v766_v9  ;;  %1836 = vmatmul.msk.bf16.gmra.mxu1 %vm399_vm0, %v2271_v50 }
 0x123   : > { %1850 = vmatmul.msk.bf16.gmra.mxu2 %vm399_vm0, %v2277_v53  ;;  %v2397_v46 = vadd.f32 %v986_v56, %v888_v10  ;;  %v1152_v53 = vld [vmem:[#allocation2 + $0xd8] sm:$0xff] }
 0x124   : > { %v1161_v30 = vpack.c.bf16 %v1153_v0, %v1152_v53 }
 0x125   : > { %1864 = vmatmul.msk.bf16.gmra.mxu3 %vm399_vm0, %v2287_v58 }
 0x126   : > { %v745_v61 = vpop.f32.mrf.mxu2  ;;  %v641_v16 = vpop.f32.mrf.mxu1 }
 0x127   : > { %v767_v18 = vadd.f32 %v745_v61, %v640_v14  ;;  %v642_v22 = vadd.f32 %v641_v16, %v2273_v52 }
 0x128   : > { %v989_v20 = vpop.f32.mrf.mxu0  ;;  %v867_v21 = vpop.f32.mrf.mxu3 }
 0x129   : > { %v889_v19 = vadd.f32 %v867_v21, %v767_v18 }
 0x12b   : > { %1878 = vmatmul.msk.bf16.gmra.mxu0 %vm399_vm0, %v1404_v63  ;;  %v2403_v50 = vadd.f32 %v989_v20, %v889_v19 }
 0x12e   : > { %v747_v23 = vpop.f32.mrf.mxu2  ;;  %v644_v40 = vpop.f32.mrf.mxu1 }
 0x12f   : > { %v768_v58 = vadd.f32 %v747_v23, %v642_v22  ;;  %v645_v52 = vadd.f32 %v644_v40, %v2289_v60 }
 0x130   : > { %v991_v31 = vpop.f32.mrf.mxu0  ;;  %v869_v33 = vpop.f32.mrf.mxu3 }
 0x131   : > { %v890_v34 = vadd.f32 %v869_v33, %v768_v58  ;;  %1837 = vmatmul.msk.bf16.gmra.mxu1 %vm399_vm0, %v1404_v63 }
 0x133   : > { %1851 = vmatmul.msk.bf16.gmra.mxu2 %vm399_vm0, %v1161_v30  ;;  %v2408_v5 = vadd.f32 %v991_v31, %v890_v34 }
 0x135   : > { %1865 = vmatmul.msk.bf16.gmra.mxu3 %vm399_vm0, %v1283_v39 }
 0x136   : > { %v750_v37 = vpop.f32.mrf.mxu2  ;;  %v646_v43 = vpop.f32.mrf.mxu1 }
 0x137   : > { %v769_v6 = vadd.f32 %v750_v37, %v645_v52  ;;  %v647_v44 = vadd.f32 %v646_v43, %v2295_v3 }
 0x138   : > { %v994_v49 = vpop.f32.mrf.mxu0  ;;  %v872_v51 = vpop.f32.mrf.mxu3 }
 0x139   : > { %v891_v42 = vadd.f32 %v872_v51, %v769_v6 }
 0x13b   : > { %1879 = vmatmul.msk.bf16.gmra.mxu0 %vm399_vm0, %v1405_v48  ;;  %v2413_v55 = vadd.f32 %v994_v49, %v891_v42 }
 0x13e   : > { %v752_v62 = vpop.f32.mrf.mxu2  ;;  %v1081_v32 = vpop.f32.mrf.mxu1 }
 0x13f   : > { %v770_v1 = vadd.f32 %v752_v62, %v647_v44  ;;  %v1121_v60 = vadd.f32 %v1081_v32, %v2305_v15 }
 0x140   : > { %v996_v2 = vpop.f32.mrf.mxu0  ;;  %v874_v4 = vpop.f32.mrf.mxu3 }
 0x141   : > { %v892_v12 = vadd.f32 %v874_v4, %v770_v1 }
 0x143   : > { %v2417_v36 = vadd.f32 %v996_v2, %v892_v12 }
 0x146   : > { %v1204_v7 = vpop.f32.mrf.mxu2  ;;  %v1083_v8 = vpop.f32.mrf.mxu1 }
 0x147   : > { %v1244_v9 = vadd.f32 %v1204_v7, %v1121_v60  ;;  %v1122_v56 = vadd.f32 %v1083_v8, %v2311_v17 }
 0x148   : > { %v1448_v24 = vpop.f32.mrf.mxu0  ;;  %v1326_v10 = vpop.f32.mrf.mxu3 }
 0x149   : > { %v1366_v13 = vadd.f32 %v1326_v10, %v1244_v9 }
 0x14b   : > { %v1488_v47 = vadd.f32 %v1448_v24, %v1366_v13 }
 0x14d   : > { %v1544_v20 = vmul.f32 %v1488_v47, %v1488_v47  ;;  %v1505_v19 = vsel %vm1504_vm2, %v1488_v47, 0.0 }
 0x14e   : > { %v1206_v3 = vpop.f32.mrf.mxu2  ;;  %v1086_v14 = vpop.f32.mrf.mxu1 }
 0x14f   : > { %v1245_v61 = vadd.f32 %v1206_v3, %v1122_v56  ;;  %v1123_v16 = vadd.f32 %v1086_v14, %v2317_v41  ;;  %v1560_v40 = vsel %vm1504_vm2, %v1544_v20, 0.0 }
 0x150   : > { %v1450_v15 = vpop.f32.mrf.mxu0  ;;  %v1328_v18 = vpop.f32.mrf.mxu3 }
 0x151   : > { %v1367_v63 = vadd.f32 %v1328_v18, %v1245_v61 }
 0x153   : > { %v1489_v21 = vadd.f32 %v1450_v15, %v1367_v63 }
 0x155   : > { %v1506_v53 = vsel %vm1504_vm2, %v1489_v21, 0.0  ;;  %v1545_v17 = vmul.f32 %v1489_v21, %v1489_v21 }
 0x156   : > { %v1507_v0 = vadd.f32 %v1506_v53, %v1505_v19  ;;  %v1209_v22 = vpop.f32.mrf.mxu2  ;;  %v1088_v23 = vpop.f32.mrf.mxu1 }
 0x157   : > { %v1561_v57 = vsel %vm1504_vm2, %v1545_v17, 0.0  ;;  %v1246_v25 = vadd.f32 %v1209_v22, %v1123_v16  ;;  %v1124_v41 = vadd.f32 %v1088_v23, %v2324_v54 }
 0x158   : > { %v1562_v58 = vadd.f32 %v1561_v57, %v1560_v40  ;;  %v1453_v30 = vpop.f32.mrf.mxu0  ;;  %v1331_v31 = vpop.f32.mrf.mxu3 }
 0x159   : > { %v1368_v33 = vadd.f32 %v1331_v31, %v1246_v25 }
 0x15b   : > { %v1490_v34 = vadd.f32 %v1453_v30, %v1368_v33 }
 0x15d   : > { %v1508_v39 = vsel %vm1504_vm2, %v1490_v34, 0.0  ;;  %v1546_v27 = vmul.f32 %v1490_v34, %v1490_v34 }
 0x15e   : > { %v1509_v29 = vadd.f32 %v1508_v39, %v1507_v0  ;;  %v1211_v52 = vpop.f32.mrf.mxu2  ;;  %v1091_v37 = vpop.f32.mrf.mxu1 }
 0x15f   : > { %v1563_v43 = vsel %vm1504_vm2, %v1546_v27, 0.0  ;;  %v1247_v6 = vadd.f32 %v1211_v52, %v1124_v41  ;;  %v1125_v48 = vadd.f32 %v1091_v37, %v2331_v11 }
 0x160   : > { %v1564_v49 = vadd.f32 %v1563_v43, %v1562_v58  ;;  %v1455_v51 = vpop.f32.mrf.mxu0  ;;  %v1333_v42 = vpop.f32.mrf.mxu3 }
 0x161   : > { %v1369_v54 = vadd.f32 %v1333_v42, %v1247_v6 }
 0x163   : > { %v1491_v44 = vadd.f32 %v1455_v51, %v1369_v54 }
 0x165   : > { %v1510_v62 = vsel %vm1504_vm2, %v1491_v44, 0.0  ;;  %v1547_v32 = vmul.f32 %v1491_v44, %v1491_v44 }
 0x166   : > { %v1511_v1 = vadd.f32 %v1510_v62, %v1509_v29  ;;  %v1214_v60 = vpop.f32.mrf.mxu2  ;;  %v1093_v2 = vpop.f32.mrf.mxu1 }
 0x167   : > { %v1565_v4 = vsel %vm1504_vm2, %v1547_v32, 0.0  ;;  %v1248_v12 = vadd.f32 %v1214_v60, %v1125_v48  ;;  %v1126_v13 = vadd.f32 %v1093_v2, %v2339_v38 }
 0x168   : > { %v1566_v7 = vadd.f32 %v1565_v4, %v1564_v49  ;;  %v1458_v8 = vpop.f32.mrf.mxu0  ;;  %v1336_v9 = vpop.f32.mrf.mxu3 }
 0x169   : > { %v1370_v56 = vadd.f32 %v1336_v9, %v1248_v12 }
 0x16b   : > { %v1492_v24 = vadd.f32 %v1458_v8, %v1370_v56 }
 0x16d   : > { %v1512_v11 = vsel %vm1504_vm2, %v1492_v24, 0.0  ;;  %v1548_v10 = vmul.f32 %v1492_v24, %v1492_v24 }
 0x16e   : > { %v1513_v47 = vadd.f32 %v1512_v11, %v1511_v1  ;;  %v1216_v3 = vpop.f32.mrf.mxu2  ;;  %v1096_v14 = vpop.f32.mrf.mxu1 }
 0x16f   : > { %v1567_v61 = vsel %vm1504_vm2, %v1548_v10, 0.0  ;;  %v1249_v16 = vadd.f32 %v1216_v3, %v1126_v13  ;;  %v1127_v17 = vadd.f32 %v1096_v14, %v2352_v45 }
 0x170   : > { %v1568_v15 = vadd.f32 %v1567_v61, %v1566_v7  ;;  %v1460_v18 = vpop.f32.mrf.mxu0  ;;  %v1338_v63 = vpop.f32.mrf.mxu3 }
 0x171   : > { %v1371_v20 = vadd.f32 %v1338_v63, %v1249_v16 }
 0x173   : > { %v1493_v21 = vadd.f32 %v1460_v18, %v1371_v20 }
 0x175   : > { %v1514_v19 = vsel %vm1504_vm2, %v1493_v21, 0.0  ;;  %v1549_v53 = vmul.f32 %v1493_v21, %v1493_v21 }
 0x176   : > { %v1515_v0 = vadd.f32 %v1514_v19, %v1513_v47  ;;  %v1219_v22 = vpop.f32.mrf.mxu2  ;;  %v1098_v23 = vpop.f32.mrf.mxu1 }
 0x177   : > { %v1569_v38 = vsel %vm1504_vm2, %v1549_v53, 0.0  ;;  %v1250_v40 = vadd.f32 %v1219_v22, %v1127_v17  ;;  %v1128_v34 = vadd.f32 %v1098_v23, %v2361_v26 }
 0x178   : > { %v1570_v57 = vadd.f32 %v1569_v38, %v1568_v15  ;;  %v1463_v25 = vpop.f32.mrf.mxu0  ;;  %v1341_v41 = vpop.f32.mrf.mxu3 }
 0x179   : > { %v1372_v58 = vadd.f32 %v1341_v41, %v1250_v40 }
 0x17b   : > { %v1494_v30 = vadd.f32 %v1463_v25, %v1372_v58 }
 0x17d   : > { %v1516_v31 = vsel %vm1504_vm2, %v1494_v30, 0.0  ;;  %v1550_v33 = vmul.f32 %v1494_v30, %v1494_v30 }
 0x17e   : > { %v1517_v39 = vadd.f32 %v1516_v31, %v1515_v0  ;;  %v1221_v27 = vpop.f32.mrf.mxu2  ;;  %v1101_v29 = vpop.f32.mrf.mxu1 }
 0x17f   : > { %v1571_v45 = vsel %vm1504_vm2, %v1550_v33, 0.0  ;;  %v1251_v52 = vadd.f32 %v1221_v27, %v1128_v34  ;;  %v1129_v54 = vadd.f32 %v1101_v29, %v2374_v28 }
 0x180   : > { %v1572_v37 = vadd.f32 %v1571_v45, %v1570_v57  ;;  %v1465_v43 = vpop.f32.mrf.mxu0  ;;  %v1343_v6 = vpop.f32.mrf.mxu3 }
 0x181   : > { %v1373_v48 = vadd.f32 %v1343_v6, %v1251_v52 }
 0x183   : > { %v1495_v49 = vadd.f32 %v1465_v43, %v1373_v48 }
 0x185   : > { %v1518_v51 = vsel %vm1504_vm2, %v1495_v49, 0.0  ;;  %v1551_v42 = vmul.f32 %v1495_v49, %v1495_v49 }
 0x186   : > { %v1519_v44 = vadd.f32 %v1518_v51, %v1517_v39  ;;  %v1224_v62 = vpop.f32.mrf.mxu2  ;;  %v1103_v32 = vpop.f32.mrf.mxu1 }
 0x187   : > { %v1573_v26 = vsel %vm1504_vm2, %v1551_v42, 0.0  ;;  %v1252_v1 = vadd.f32 %v1224_v62, %v1129_v54  ;;  %v1130_v56 = vadd.f32 %v1103_v32, %v2383_v59 }
 0x188   : > { %v1574_v60 = vadd.f32 %v1573_v26, %v1572_v37  ;;  %v1468_v2 = vpop.f32.mrf.mxu0  ;;  %v1346_v4 = vpop.f32.mrf.mxu3 }
 0x189   : > { %v1374_v12 = vadd.f32 %v1346_v4, %v1252_v1 }
 0x18b   : > { %v1496_v7 = vadd.f32 %v1468_v2, %v1374_v12 }
 0x18d   : > { %v1520_v8 = vsel %vm1504_vm2, %v1496_v7, 0.0  ;;  %v1552_v9 = vmul.f32 %v1496_v7, %v1496_v7 }
 0x18e   : > { %v1521_v24 = vadd.f32 %v1520_v8, %v1519_v44  ;;  %v1226_v11 = vpop.f32.mrf.mxu2  ;;  %v1106_v10 = vpop.f32.mrf.mxu1 }
 0x18f   : > { %v1575_v28 = vsel %vm1504_vm2, %v1552_v9, 0.0  ;;  %v1253_v13 = vadd.f32 %v1226_v11, %v1130_v56  ;;  %v1131_v63 = vadd.f32 %v1106_v10, %v2390_v35 }
 0x190   : > { %v1576_v47 = vadd.f32 %v1575_v28, %v1574_v60  ;;  %v1470_v3 = vpop.f32.mrf.mxu0  ;;  %v1348_v14 = vpop.f32.mrf.mxu3 }
 0x191   : > { %v1375_v61 = vadd.f32 %v1348_v14, %v1253_v13 }
 0x193   : > { %v1497_v16 = vadd.f32 %v1470_v3, %v1375_v61 }
 0x195   : > { %v1522_v15 = vsel %vm1504_vm2, %v1497_v16, 0.0  ;;  %v1553_v18 = vmul.f32 %v1497_v16, %v1497_v16 }
 0x196   : > { %v1523_v20 = vadd.f32 %v1522_v15, %v1521_v24  ;;  %v1229_v21 = vpop.f32.mrf.mxu2  ;;  %v1108_v19 = vpop.f32.mrf.mxu1 }
 0x197   : > { %v1577_v59 = vsel %vm1504_vm2, %v1553_v18, 0.0  ;;  %v1254_v53 = vadd.f32 %v1229_v21, %v1131_v63  ;;  %v1132_v25 = vadd.f32 %v1108_v19, %v2397_v46 }
 0x198   : > { %v1578_v17 = vadd.f32 %v1577_v59, %v1576_v47  ;;  %v1473_v0 = vpop.f32.mrf.mxu0  ;;  %v1351_v22 = vpop.f32.mrf.mxu3 }
 0x199   : > { %v1376_v23 = vadd.f32 %v1351_v22, %v1254_v53 }
 0x19b   : > { %v1498_v38 = vadd.f32 %v1473_v0, %v1376_v23 }
 0x19d   : > { %v1524_v40 = vsel %vm1504_vm2, %v1498_v38, 0.0  ;;  %v1554_v57 = vmul.f32 %v1498_v38, %v1498_v38 }
 0x19e   : > { %v1525_v41 = vadd.f32 %v1524_v40, %v1523_v20  ;;  %v1231_v58 = vpop.f32.mrf.mxu2  ;;  %v1111_v30 = vpop.f32.mrf.mxu1 }
 0x19f   : > { %v1579_v35 = vsel %vm1504_vm2, %v1554_v57, 0.0  ;;  %v1255_v31 = vadd.f32 %v1231_v58, %v1132_v25  ;;  %v1133_v37 = vadd.f32 %v1111_v30, %v2403_v50 }
 0x1a0   : > { %v1580_v33 = vadd.f32 %v1579_v35, %v1578_v17  ;;  %v1475_v34 = vpop.f32.mrf.mxu0  ;;  %v1353_v39 = vpop.f32.mrf.mxu3 }
 0x1a1   : > { %v1377_v27 = vadd.f32 %v1353_v39, %v1255_v31 }
 0x1a3   : > { %v1499_v29 = vadd.f32 %v1475_v34, %v1377_v27 }
 0x1a5   : > { %v1526_v45 = vsel %vm1504_vm2, %v1499_v29, 0.0  ;;  %v1555_v52 = vmul.f32 %v1499_v29, %v1499_v29 }
 0x1a6   : > { %v1527_v43 = vadd.f32 %v1526_v45, %v1525_v41  ;;  %v1234_v6 = vpop.f32.mrf.mxu2  ;;  %v1113_v48 = vpop.f32.mrf.mxu1 }
 0x1a7   : > { %v1581_v46 = vsel %vm1504_vm2, %v1555_v52, 0.0  ;;  %v1256_v49 = vadd.f32 %v1234_v6, %v1133_v37  ;;  %v1134_v1 = vadd.f32 %v1113_v48, %v2408_v5 }
 0x1a8   : > { %v1582_v51 = vadd.f32 %v1581_v46, %v1580_v33  ;;  %v1478_v42 = vpop.f32.mrf.mxu0  ;;  %v1356_v54 = vpop.f32.mrf.mxu3 }
 0x1a9   : > { %v1378_v44 = vadd.f32 %v1356_v54, %v1256_v49 }
 0x1ab   : > { %v1500_v62 = vadd.f32 %v1478_v42, %v1378_v44 }
 0x1ad   : > { %v1528_v32 = vsel %vm1504_vm2, %v1500_v62, 0.0  ;;  %v1556_v26 = vmul.f32 %v1500_v62, %v1500_v62 }
 0x1ae   : > { %v1529_v60 = vadd.f32 %v1528_v32, %v1527_v43  ;;  %v1236_v2 = vpop.f32.mrf.mxu2  ;;  %v1116_v12 = vpop.f32.mrf.mxu1 }
 0x1af   : > { %v1583_v50 = vsel %vm1504_vm2, %v1556_v26, 0.0  ;;  %v1257_v4 = vadd.f32 %v1236_v2, %v1134_v1  ;;  %v1135_v28 = vadd.f32 %v1116_v12, %v2413_v55 }
 0x1b0   : > { %v1584_v7 = vadd.f32 %v1583_v50, %v1582_v51  ;;  %v1480_v8 = vpop.f32.mrf.mxu0  ;;  %v1358_v9 = vpop.f32.mrf.mxu3 }
 0x1b1   : > { %v1379_v56 = vadd.f32 %v1358_v9, %v1257_v4 }
 0x1b3   : > { %v1501_v24 = vadd.f32 %v1480_v8, %v1379_v56 }
 0x1b5   : > { %v1530_v11 = vsel %vm1504_vm2, %v1501_v24, 0.0  ;;  %v1557_v10 = vmul.f32 %v1501_v24, %v1501_v24 }
 0x1b6   : > { %v1531_v13 = vadd.f32 %v1530_v11, %v1529_v60  ;;  %v1239_v47 = vpop.f32.mrf.mxu2  ;;  %v1118_v18 = vpop.f32.mrf.mxu1 }
 0x1b7   : > { %v1585_v5 = vsel %vm1504_vm2, %v1557_v10, 0.0  ;;  %v1258_v3 = vadd.f32 %v1239_v47, %v1135_v28  ;;  %v1136_v19 = vadd.f32 %v1118_v18, %v2417_v36 }
 0x1b8   : > { %v1586_v14 = vadd.f32 %v1585_v5, %v1584_v7  ;;  %v1483_v61 = vpop.f32.mrf.mxu0  ;;  %v1361_v16 = vpop.f32.mrf.mxu3 }
 0x1b9   : > { %v1380_v15 = vadd.f32 %v1361_v16, %v1258_v3 }
 0x1bb   : > { %v1502_v63 = vadd.f32 %v1483_v61, %v1380_v15 }
 0x1bd   : > { %v1532_v20 = vsel %vm1504_vm2, %v1502_v63, 0.0  ;;  %v1558_v21 = vmul.f32 %v1502_v63, %v1502_v63 }
 0x1be   : > { %v1533_v59 = vadd.f32 %v1532_v20, %v1531_v13  ;;  %v1241_v55 = vpop.f32.mrf.mxu2 }
 0x1bf   : > { %v1587_v53 = vsel %vm1504_vm2, %v1558_v21, 0.0  ;;  %v1259_v17 = vadd.f32 %v1241_v55, %v1136_v19 }
 0x1c0   : > { %v1588_v0 = vadd.f32 %v1587_v53, %v1586_v14  ;;  %v1363_v22 = vpop.f32.mrf.mxu3  ;;  %v1485_v38 = vpop.f32.mrf.mxu0 }
 0x1c1   : > { %v1381_v23 = vadd.f32 %v1363_v22, %v1259_v17 }
 0x1c3   : > { %v1503_v40 = vadd.f32 %v1485_v38, %v1381_v23 }
 0x1c5   : > { %v1534_v57 = vsel %vm1504_vm2, %v1503_v40, 0.0  ;;  %v1559_v25 = vmul.f32 %v1503_v40, %v1503_v40 }
 0x1c6   : > { %v1535_v41 = vadd.f32 %v1534_v57, %v1533_v59 }
 0x1c7   : > { %v1589_v58 = vsel %vm1504_vm2, %v1559_v25, 0.0 }
 0x1c8   : > { %v1536_v36 = vrot.slane %v1535_v41, 4  ;;  %v1590_v30 = vadd.f32 %v1589_v58, %v1588_v0 }
 0x1ca   : > { %v1537_v35 = vadd.f32 %v1536_v36, %v1535_v41  ;;  %v1591_v31 = vrot.slane %v1590_v30, 4 }
 0x1cc   : > { %v1538_v33 = vrot.slane %v1537_v35, 2  ;;  %v1592_v34 = vadd.f32 %v1591_v31, %v1590_v30 }
 0x1ce   : > { %v1539_v39 = vadd.f32 %v1538_v33, %v1537_v35  ;;  %v1593_v27 = vrot.slane %v1592_v34, 2 }
 0x1d0   : > { %v1540_v29 = vrot.slane %v1539_v39, 1  ;;  %v1594_v45 = vadd.f32 %v1593_v27, %v1592_v34 }
 0x1d2   : > { %v1541_v52 = vadd.f32 %v1540_v29, %v1539_v39  ;;  %v1595_v37 = vrot.slane %v1594_v45, 1 }
 0x1d4   : > { %1543 = vst.msk [vmem:[%s358_s7] sm:$0x1] %vm1542_vm3, %v1541_v52  ;;  %v1596_v43 = vadd.f32 %v1595_v37, %v1594_v45 }
 0x1d6   : > { %1597 = vst.msk [vmem:[%s358_s7 + $0x1] sm:$0x1] %vm1542_vm3, %v1596_v43 }
 0x1d7 PF: > { %s14_s19 = sadd.s32 1, %s1987_s19   ;;  %s2492_s15 = smov %s1979_s17 }
 0x1d8   : > { %p11_p13 = scmp.ge.s32.totalorder %s14_s19, 6   ;;  %s2493_s16 = smov %s1983_s18 }
 0x1d9   : > { %s2494_s17 = smov %s2497_s20  ;;  %s2495_s18 = smov %s2501_s21 }
 0x1da   :  { %13 = sbr.rel (!%p11_p13) target bundleno = 3 (0x3), region = 83 }

// kernel: fcn_head.3
= control target key start
LH: loop header
LB: loop body
LE: loop exit
PB: predicated region body
PF: predicated region fallthrough
CT: control target
= control target key end

     0   :  { %s2246_s27 = smov 0   ;;  %s2248_s28 = smov 0   ;;  %s2790_s0 = inlined_call_operand.vmem [shape: f32[2,16,16,16], index: 0, kind: input, shape index: {}, may-alias: {0,1,2}]   ;;  %s2791_s1 = inlined_call_operand.vmem [shape: f32[2,16,16,16], index: 1, kind: input, shape index: {}, may-alias: {0,1,2}]   ;;  %s2792_s2 = inlined_call_operand.vmem [shape: f32[2,16,16,16], index: 2, kind: input, shape index: {}, may-alias: {0,1,2}]   ;;  %s2793_s3 = inlined_call_operand.vmem [shape: bf16[9,16,8], index: 3, kind: input, shape index: {}]   ;;  %s2794_s4 = inlined_call_operand.vmem [shape: f32[1,8], index: 4, kind: input, shape index: {}]   ;;  %s2795_s5 = inlined_call_operand.vmem [shape: f32[1,8], index: 5, kind: input, shape index: {}]   ;;  %s2796_s6 = inlined_call_operand.vmem [shape: bf16[8,16], index: 6, kind: input, shape index: {}]   ;;  %s2797_s7 = inlined_call_operand.vmem [shape: f32[1,16], index: 7, kind: input, shape index: {}]   ;;  %s2798_s8 = inlined_call_operand.vmem [shape: f32[2,16,16,16], index: 8, kind: output, shape index: {}]  }
   0x1   :  { %s2250_s29 = smov 0   ;;  %s2252_s30 = smov 0  }
   0x2   :  { %s2254_s9 = smov 0  }
   0x3 LB: > { %s27_s10 = sadd.s32 1, %s2190_s29  ;;  %s30_s11 = sadd.s32 1, %s2194_s30  ;;  %s2198_s9 = sphi %s2254_s9, %s18_s9   ;;  %s2194_s30 = sphi %s2252_s30, %s2803_s30   ;;  %s2190_s29 = sphi %s2250_s29, %s2802_s29   ;;  %s2186_s28 = sphi %s2248_s28, %s2801_s28   ;;  %s2182_s27 = sphi %s2246_s27, %s2800_s27  }
   0x4   : > { %p28_p0 = scmp.ge.s32.totalorder %s27_s10, 2  ;;  %p1931_p1 = scmp.ge.s32.totalorder %s2198_s9, 1 }
   0x5   : > { %p348_p2 = scmp.lt.s32.totalorder %s2198_s9, 5 }
   0x6   : > { %s2805_s10 = smov (%p28_p0, %s27_s10), 0  ;;  %s2807_s11 = smov (!%p28_p0, %s30_s11), %s2194_s30 }
   0x7   : > { %p349_p3 = pnand %p1931_p1, %p348_p2  ;;  %p32_p4 = scmp.ge.s32.totalorder %s2807_s11, 2 }
   0x8   : > { %s2285_s16 = sshll.u32 (!%p349_p3), %s2182_s27, 3  ;;  %p419_p5 = scmp.lt.s32.totalorder (!%p349_p3), %s2186_s28, 1 }
   0x9   : > { %s2809_s11 = smov (%p32_p4, %s2807_s11), 0  ;;  %352 = sbr.rel (%p349_p3) target bundleno = 633 (0x279), region = 52 }
   0xa   : > { %p421_p6 = scmp.lt.s32.totalorder (!%p349_p3), %s2285_s16, 15  ;;  %s2295_s21 = sadd.s32 (!%p349_p3), 4294967295, %s2285_s16 }
   0xb   : > { %p431_p7 = scmp.gt.s32.totalorder (!%p349_p3), %s2295_s21, 0  ;;  %p475_p8 = scmp.gt.s32.totalorder (!%p349_p3), %s2182_s27, 0 }
   0xc   : > { %p1938_p9 = scmp.lt.s32.totalorder (!%p349_p3), %s2295_s21, 15  ;;  %p483_p11 = scmp.lt.s32.totalorder (!%p349_p3), %s2182_s27, 1 }
   0xe   : > { %v2094_v0 = vld [vmem:[%s2793_s3 + $0x8] sm:$0xff]  ;;  %v2093_v1 = vld [vmem:[%s2793_s3] sm:$0xff]  ;;  %vm491_vm0 = vcmask 122880   ;;  %v2095_v2 = vld [vmem:[%s2793_s3 + $0x10] sm:$0xff]  ;;  %s2811_s28 = smov (!%p419_p5, %s2186_s28), 1  ;;  %v2200_v4 = vmov 0.0  }
   0xf   : > { %v2096_v3 = vld [vmem:[%s2793_s3 + $0x18] sm:$0xff]  ;;  %2102 = vmatpush.bf16.msra.mxu2 %v2094_v0  ;;  %2103 = vmatpush.bf16.msra.mxu3 %v2093_v1  ;;  %496 = vst.msk [vmem:[#allocation2 + $0x60] sm:$0x1] %vm491_vm0, %v2200_v4  ;;  %s422_s22 = scalar_select %p421_p6, %s2285_s16, 15  ;;  %v2097_v5 = vld [vmem:[%s2793_s3 + $0x20] sm:$0xff]  ;;  %vm512_vm1 = vcmask 130048  }
  0x10   : > { %492 = vst.msk [vmem:[#allocation2] sm:$0x1] %vm491_vm0, %v2200_v4  ;;  %641 = vmatpush.bf16.msra.mxu0 %v2094_v0  ;;  %s2303_s25 = sshll.u32 %s2811_s28, 5  ;;  %720 = vmatpush.bf16.msra.mxu1 %v2093_v1  ;;  %s2813_s21 = smov (!%p431_p7, %s2295_s21), 0  ;;  %v2099_v52 = vld [vmem:[%s2793_s3 + $0x30] sm:$0xff]  ;;  %v2100_v53 = vld [vmem:[%s2793_s3 + $0x38] sm:$0xff] }
  0x11   : > { %493 = vst.msk [vmem:[#allocation2 + $0x18] sm:$0x1] %vm491_vm0, %v2200_v4  ;;  %s1933_s26 = sshll.u32 %s422_s22, 1  ;;  %s2815_s21 = smov (!%p1938_p9, %s2813_s21), 15  ;;  %vm1711_vm2 = vcmask 1043456   ;;  %vm1686_vm3 = vcmask 64512  }
  0x12   : > { %494 = vst.msk [vmem:[#allocation2 + $0x30] sm:$0x1] %vm491_vm0, %v2200_v4  ;;  %s2309_s12 = sadd.s32 %s2303_s25, %s1933_s26  ;;  %s1943_s17 = sshll.u32 %s2815_s21, 1 }
  0x13   : > { %826 = vmatpush.bf16.msrb.mxu2 %v2095_v2  ;;  %948 = vmatpush.bf16.msrb.mxu3 %v2096_v3  ;;  %495 = vst.msk [vmem:[#allocation2 + $0x48] sm:$0x1] %vm491_vm0, %v2200_v4  ;;  %s1935_s28 = sshll.u32 %s2309_s12, 3  ;;  %s439_s18 = sadd.s32 %s1943_s17, %s2303_s25  ;;  %v2098_v2 = vld [vmem:[%s2793_s3 + $0x28] sm:$0xff]  ;;  %v2101_v3 = vld [vmem:[%s2793_s3 + $0x40] sm:$0xff] }
  0x14   : > { %1070 = vmatpush.bf16.msrb.mxu0 %v2097_v5  ;;  %497 = vst.msk [vmem:[#allocation2 + $0x78] sm:$0x1] %vm491_vm0, %v2200_v4  ;;  %s2321_s15 = scalar_lea.vmem %s2790_s0, %s1935_s28  ;;  %s1945_s19 = sshll.u32 %s439_s18, 3  ;;  %1192 = vmatpush.bf16.msrb.mxu1 %v2098_v2 }
  0x15   : > { %498 = vst.msk [vmem:[#allocation2 + $0x90] sm:$0x1] %vm491_vm0, %v2200_v4  ;;  %v521_v6 = vld [vmem:[%s2321_s15 + $0x30] sm:$0xff]  ;;  %v522_v7 = vld [vmem:[%s2321_s15 + $0x38] sm:$0xff]  ;;  %s441_s23 = scalar_lea.vmem %s2791_s1, %s1945_s19  ;;  %v523_v16 = vld [vmem:[%s2321_s15 + $0x40] sm:$0xff] }
  0x16   : > { %499 = vst.msk [vmem:[#allocation2 + $0xa8] sm:$0x1] %vm491_vm0, %v2200_v4  ;;  %s2146_s24 = scalar_select %p475_p8, 255, 0  ;;  %v524_v17 = vld [vmem:[%s2321_s15 + $0x48] sm:$0xff]  ;;  %v515_v18 = vld [vmem:[%s2321_s15] sm:$0xff] }
  0x17   : > { %538 = vst.msk [vmem:[#allocation2 + $0x61] sm:$0xff] %vm512_vm1, %v521_v6  ;;  %v516_v19 = vld [vmem:[%s2321_s15 + $0x8] sm:$0xff]  ;;  %v525_v20 = vld [vmem:[%s2321_s15 + $0x50] sm:$0xff]  ;;  %v526_v21 = vld [vmem:[%s2321_s15 + $0x58] sm:$0xff]  ;;  %s2152_s13 = scalar_select %p483_p11, 255, 0 }
  0x18   : > { %539 = vst.msk [vmem:[#allocation2 + $0x69] sm:$0xff] %vm512_vm1, %v522_v7  ;;  %v2147_v14 = vld [vmem:[%s441_s23] sm:%s2146_s24]  ;;  %v2150_v15 = vld [vmem:[%s441_s23 + $0x8] sm:%s2146_s24]  ;;  %s447_s23 = sadd.s32 8, %s2285_s16 }
  0x19   : > { %500 = vst.msk [vmem:[#allocation2 + $0xc0] sm:$0x1] %vm491_vm0, %v2200_v4  ;;  %v517_v22 = vld [vmem:[%s2321_s15 + $0x10] sm:$0xff]  ;;  %v518_v23 = vld [vmem:[%s2321_s15 + $0x18] sm:$0xff]  ;;  %v527_v36 = vld [vmem:[%s2321_s15 + $0x60] sm:$0xff]  ;;  %p2599_p10 = scmp.lt.s32.totalorder %s447_s23, 15 }
  0x1a   : > { %501 = vst.msk [vmem:[#allocation2 + $0xd8] sm:$0x1] %vm491_vm0, %v2200_v4  ;;  %v528_v37 = vld [vmem:[%s2321_s15 + $0x68] sm:$0xff]  ;;  %v519_v38 = vld [vmem:[%s2321_s15 + $0x20] sm:$0xff] }
  0x1b   : > { %502 = vst.msk [vmem:[#allocation2 + $0x11] sm:$0x1] %vm491_vm0, %v2200_v4  ;;  %v520_v39 = vld [vmem:[%s2321_s15 + $0x28] sm:$0xff]  ;;  %s2817_s23 = smov (!%p2599_p10, %s447_s23), 15 }
  0x1c   : > { %503 = vst.msk [vmem:[#allocation2 + $0x29] sm:$0x1] %vm491_vm0, %v2200_v4  ;;  %s2819_s23 = smov (!%p2599_p10, %s2817_s23), 15 }
  0x1d   : > { %504 = vst.msk [vmem:[#allocation2 + $0x41] sm:$0x1] %vm491_vm0, %v2200_v4  ;;  %s1950_s16 = sshll.u32 %s2819_s23, 1 }
  0x1e   : > { %v585_v8 = vld [vmem:[#allocation2 + $0x61] sm:$0xff]  ;;  %505 = vst.msk [vmem:[#allocation2 + $0x59] sm:$0x1] %vm491_vm0, %v2200_v4  ;;  %s456_s21 = sadd.s32 %s1950_s16, %s2303_s25  ;;  %s2741_s16 = scalar_lea.vmem %s2798_s8, %s1935_s28 }
  0x1f   : > { %v559_v9 = vld [vmem:[#allocation2 + $0x60] sm:$0xff]  ;;  %v586_v10 = vld [vmem:[#allocation2 + $0x69] sm:$0xff]  ;;  %506 = vst.msk [vmem:[#allocation2 + $0x71] sm:$0x1] %vm491_vm0, %v2200_v4  ;;  %s1952_s26 = sshll.u32 %s456_s21, 3 }
  0x20   : > { %v560_v11 = vld [vmem:[#allocation2 + $0x68] sm:$0xff]  ;;  %v2345_v12 = vpack.c.bf16 %v586_v10, %v585_v8  ;;  %507 = vst.msk [vmem:[#allocation2 + $0x89] sm:$0x1] %vm491_vm0, %v2200_v4  ;;  %s458_s18 = scalar_lea.vmem %s2792_s2, %s1952_s26 }
  0x21   : > { %v2347_v13 = vpack.c.bf16 %v560_v11, %v559_v9  ;;  %508 = vst.msk [vmem:[#allocation2 + $0xa1] sm:$0x1] %vm491_vm0, %v2200_v4 }
  0x22   : > { %1967 = vmatmul.msk.bf16.vlgmr.msra.gmra.mxu2 %vm512_vm1, %v2345_v12  ;;  %509 = vst.msk [vmem:[#allocation2 + $0xb9] sm:$0x1] %vm491_vm0, %v2200_v4 }
  0x23   : > { %1979 = vmatmul.msk.bf16.vlgmr.msra.gmra.mxu3 %vm512_vm1, %v2347_v13  ;;  %510 = vst.msk [vmem:[#allocation2 + $0xd1] sm:$0x1] %vm491_vm0, %v2200_v4  ;;  %1315 = vmatpush.bf16.msra.mxu2 %v2099_v52 }
  0x24   : > { %511 = vst.msk [vmem:[#allocation2 + $0xe9] sm:$0x1] %vm491_vm0, %v2200_v4  ;;  %1437 = vmatpush.bf16.msra.mxu3 %v2100_v53 }
  0x25   : > { %513 = vst.msk [vmem:[#allocation2 + $0x1] sm:$0xff] %vm512_vm1, %v2147_v14 }
  0x26   : > { %514 = vst.msk [vmem:[#allocation2 + $0x9] sm:$0xff] %vm512_vm1, %v2150_v15 }
  0x27   : > { %540 = vst.msk [vmem:[#allocation2 + $0x79] sm:$0xff] %vm512_vm1, %v523_v16 }
  0x28   : > { %541 = vst.msk [vmem:[#allocation2 + $0x81] sm:$0xff] %vm512_vm1, %v524_v17 }
  0x29   : > { %532 = vst.msk [vmem:[#allocation2 + $0x19] sm:$0xff] %vm512_vm1, %v515_v18 }
  0x2a   : > { %533 = vst.msk [vmem:[#allocation2 + $0x21] sm:$0xff] %vm512_vm1, %v516_v19 }
  0x2b   : > { %542 = vst.msk [vmem:[#allocation2 + $0x91] sm:$0xff] %vm512_vm1, %v525_v20 }
  0x2c   : > { %v577_v24 = vld [vmem:[#allocation2 + $0x1] sm:$0xff]  ;;  %543 = vst.msk [vmem:[#allocation2 + $0x99] sm:$0xff] %vm512_vm1, %v526_v21 }
  0x2d   : > { %v551_v25 = vld [vmem:[#allocation2] sm:$0xff]  ;;  %v578_v26 = vld [vmem:[#allocation2 + $0x9] sm:$0xff]  ;;  %534 = vst.msk [vmem:[#allocation2 + $0x31] sm:$0xff] %vm512_vm1, %v517_v22 }
  0x2e   : > { %v552_v27 = vld [vmem:[#allocation2 + $0x8] sm:$0xff]  ;;  %v593_v28 = vpack.c.bf16 %v578_v26, %v577_v24  ;;  %v587_v30 = vld [vmem:[#allocation2 + $0x79] sm:$0xff]  ;;  %535 = vst.msk [vmem:[#allocation2 + $0x39] sm:$0xff] %vm512_vm1, %v518_v23 }
  0x2f   : > { %v567_v29 = vpack.c.bf16 %v552_v27, %v551_v25  ;;  %v561_v31 = vld [vmem:[#allocation2 + $0x78] sm:$0xff]  ;;  %v588_v32 = vld [vmem:[#allocation2 + $0x81] sm:$0xff]  ;;  %544 = vst.msk [vmem:[#allocation2 + $0xa9] sm:$0xff] %vm512_vm1, %v527_v36  ;;  %v763_v9 = vld [vmem:[#allocation2 + $0xa] sm:$0xff] }
  0x30   : > { %v562_v33 = vld [vmem:[#allocation2 + $0x80] sm:$0xff]  ;;  %1963 = vmatmul.msk.bf16.vlgmr.msra.gmra.mxu0 %vm512_vm1, %v593_v28  ;;  %v2378_v34 = vpack.c.bf16 %v588_v32, %v587_v30  ;;  %545 = vst.msk [vmem:[#allocation2 + $0xb1] sm:$0xff] %vm512_vm1, %v528_v37  ;;  %v553_v42 = vld [vmem:[#allocation2 + $0x18] sm:$0xff]  ;;  %v1135_v25 = vld [vmem:[#allocation2 + $0x6a] sm:$0xff] }
  0x31   : > { %1975 = vmatmul.msk.bf16.vlgmr.msra.gmra.mxu1 %vm512_vm1, %v567_v29  ;;  %v2380_v35 = vpack.c.bf16 %v562_v33, %v561_v31  ;;  %536 = vst.msk [vmem:[#allocation2 + $0x49] sm:$0xff] %vm512_vm1, %v519_v38  ;;  %v579_v40 = vld [vmem:[#allocation2 + $0x19] sm:$0xff]  ;;  %v580_v41 = vld [vmem:[#allocation2 + $0x21] sm:$0xff]  ;;  %1559 = vmatpush.bf16.msra.mxu0 %v2101_v3 }
  0x32   : > { %1968 = vmatmul.msk.bf16.gmra.mxu2 %vm512_vm1, %v2378_v34  ;;  %537 = vst.msk [vmem:[#allocation2 + $0x51] sm:$0xff] %vm512_vm1, %v520_v39  ;;  %v554_v43 = vld [vmem:[#allocation2 + $0x20] sm:$0xff]  ;;  %v589_v44 = vld [vmem:[#allocation2 + $0x91] sm:$0xff]  ;;  %v594_v48 = vpack.c.bf16 %v580_v41, %v579_v40 }
  0x33   : > { %1980 = vmatmul.msk.bf16.gmra.mxu3 %vm512_vm1, %v2380_v35  ;;  %v590_v45 = vld [vmem:[#allocation2 + $0x99] sm:$0xff]  ;;  %v563_v46 = vld [vmem:[#allocation2 + $0x90] sm:$0xff]  ;;  %v568_v49 = vpack.c.bf16 %v554_v43, %v553_v42  ;;  %v762_v8 = vld [vmem:[#allocation2 + $0x2] sm:$0xff] }
  0x34   : > { %v564_v47 = vld [vmem:[#allocation2 + $0x98] sm:$0xff]  ;;  %v2394_v50 = vpack.c.bf16 %v590_v45, %v589_v44  ;;  %v555_v56 = vld [vmem:[#allocation2 + $0x30] sm:$0xff]  ;;  %v778_v14 = vpack.c.bf16 %v763_v9, %v762_v8  ;;  %v1129_v16 = vld [vmem:[#allocation2 + $0x22] sm:$0xff] }
  0x35   : > { %v2396_v51 = vpack.c.bf16 %v564_v47, %v563_v46  ;;  %v581_v54 = vld [vmem:[#allocation2 + $0x31] sm:$0xff]  ;;  %v582_v55 = vld [vmem:[#allocation2 + $0x39] sm:$0xff]  ;;  %v1134_v24 = vld [vmem:[#allocation2 + $0x62] sm:$0xff] }
  0x36   : > { %v556_v57 = vld [vmem:[#allocation2 + $0x38] sm:$0xff]  ;;  %v591_v58 = vld [vmem:[#allocation2 + $0xa9] sm:$0xff]  ;;  %v2410_v62 = vpack.c.bf16 %v582_v55, %v581_v54  ;;  %v2467_v26 = vpack.c.bf16 %v1135_v25, %v1134_v24 }
  0x37   : > { %v592_v59 = vld [vmem:[#allocation2 + $0xb1] sm:$0xff]  ;;  %v565_v60 = vld [vmem:[#allocation2 + $0xa8] sm:$0xff]  ;;  %v2412_v63 = vpack.c.bf16 %v556_v57, %v555_v56  ;;  %v1128_v15 = vld [vmem:[#allocation2 + $0x1a] sm:$0xff] }
  0x38   : > { %v566_v61 = vld [vmem:[#allocation2 + $0xb0] sm:$0xff]  ;;  %v2414_v0 = vpack.c.bf16 %v592_v59, %v591_v58  ;;  %v557_v6 = vld [vmem:[#allocation2 + $0x48] sm:$0xff]  ;;  %v1144_v17 = vpack.c.bf16 %v1129_v16, %v1128_v15  ;;  %v1131_v19 = vld [vmem:[#allocation2 + $0x3a] sm:$0xff] }
  0x39   : > { %v2416_v1 = vpack.c.bf16 %v566_v61, %v565_v60  ;;  %v583_v4 = vld [vmem:[#allocation2 + $0x49] sm:$0xff]  ;;  %v584_v5 = vld [vmem:[#allocation2 + $0x51] sm:$0xff]  ;;  %v1136_v30 = vld [vmem:[#allocation2 + $0x7a] sm:$0xff] }
  0x3a   : > { %v558_v7 = vld [vmem:[#allocation2 + $0x50] sm:$0xff]  ;;  %v2432_v10 = vpack.c.bf16 %v584_v5, %v583_v4  ;;  %v1137_v31 = vld [vmem:[#allocation2 + $0x82] sm:$0xff]  ;;  %v530_v42 = vld [vmem:[%s2321_s15 + $0x78] sm:$0xff] }
  0x3b   : > { %v2434_v11 = vpack.c.bf16 %v558_v7, %v557_v6  ;;  %v1130_v18 = vld [vmem:[#allocation2 + $0x32] sm:$0xff]  ;;  %v1132_v21 = vld [vmem:[#allocation2 + $0x4a] sm:$0xff]  ;;  %v2479_v32 = vpack.c.bf16 %v1137_v31, %v1136_v30  ;;  %547 = vst.msk [vmem:[#allocation2 + $0xc9] sm:$0xff] %vm512_vm1, %v530_v42 }
  0x3c   : > { %v2447_v20 = vpack.c.bf16 %v1131_v19, %v1130_v18  ;;  %v1133_v22 = vld [vmem:[#allocation2 + $0x52] sm:$0xff]  ;;  %v1140_v4 = vld [vmem:[#allocation2 + $0xaa] sm:$0xff] }
  0x3d   : > { %v2457_v23 = vpack.c.bf16 %v1133_v22, %v1132_v21  ;;  %v529_v41 = vld [vmem:[%s2321_s15 + $0x70] sm:$0xff] }
  0x3e   : > { %546 = vst.msk [vmem:[#allocation2 + $0xc1] sm:$0xff] %vm512_vm1, %v529_v41  ;;  %v1141_v5 = vld [vmem:[#allocation2 + $0xb2] sm:$0xff] }
  0x3f   : > { %v2523_v8 = vpack.c.bf16 %v1141_v5, %v1140_v4 }
  0x40   : > { %1964 = vmatmul.msk.bf16.gmra.mxu0 %vm512_vm1, %v594_v48 }
  0x41   : > { %1976 = vmatmul.msk.bf16.gmra.mxu1 %vm512_vm1, %v568_v49 }
  0x42   : > { %1969 = vmatmul.msk.bf16.gmra.mxu2 %vm512_vm1, %v2394_v50  ;;  %v1021_v30 = vld [vmem:[#allocation2 + $0xc9] sm:$0xff] }
  0x43   : > { %1981 = vmatmul.msk.bf16.gmra.mxu3 %vm512_vm1, %v2396_v51 }
  0x45   : > { %v898_v6 = vld [vmem:[#allocation2 + $0xc0] sm:$0xff]  ;;  %v899_v7 = vld [vmem:[#allocation2 + $0xc8] sm:$0xff] }
  0x46   : > { %v2527_v18 = vpack.c.bf16 %v899_v7, %v898_v6  ;;  %v1142_v31 = vld [vmem:[#allocation2 + $0xc2] sm:$0xff] }
  0x50   : > { %1965 = vmatmul.msk.bf16.gmra.mxu0 %vm512_vm1, %v2410_v62 }
  0x51   : > { %1977 = vmatmul.msk.bf16.gmra.mxu1 %vm512_vm1, %v2412_v63 }
  0x52   : > { %1970 = vmatmul.msk.bf16.gmra.mxu2 %vm512_vm1, %v2414_v0 }
  0x53   : > { %1982 = vmatmul.msk.bf16.gmra.mxu3 %vm512_vm1, %v2416_v1 }
  0x60   : > { %1966 = vmatmul.msk.bf16.gmra.mxu0 %vm512_vm1, %v2432_v10 }
  0x61   : > { %1978 = vmatmul.msk.bf16.gmra.mxu1 %vm512_vm1, %v2434_v11 }
  0x62   : > { %1989 = vmatmul.msk.bf16.vlgmr.msrb.gmra.mxu2 %vm512_vm1, %v778_v14 }
  0x63   : > { %2003 = vmatmul.msk.bf16.vlgmr.msrb.gmra.mxu3 %vm512_vm1, %v568_v49  ;;  %v1139_v49 = vld [vmem:[#allocation2 + $0x9a] sm:$0xff] }
  0x70   : > { %2017 = vmatmul.msk.bf16.vlgmr.msrb.gmra.mxu0 %vm512_vm1, %v594_v48  ;;  %v1138_v48 = vld [vmem:[#allocation2 + $0x92] sm:$0xff] }
  0x71   : > { %2031 = vmatmul.msk.bf16.vlgmr.msrb.gmra.mxu1 %vm512_vm1, %v1144_v17  ;;  %v2503_v52 = vpack.c.bf16 %v1139_v49, %v1138_v48 }
  0x72   : > { %1990 = vmatmul.msk.bf16.gmra.mxu2 %vm512_vm1, %v1144_v17 }
  0x73   : > { %2004 = vmatmul.msk.bf16.gmra.mxu3 %vm512_vm1, %v2412_v63 }
  0x80   : > { %2018 = vmatmul.msk.bf16.gmra.mxu0 %vm512_vm1, %v2410_v62 }
  0x81   : > { %2032 = vmatmul.msk.bf16.gmra.mxu1 %vm512_vm1, %v2447_v20 }
  0x82   : > { %1991 = vmatmul.msk.bf16.gmra.mxu2 %vm512_vm1, %v2447_v20 }
  0x83   : > { %2005 = vmatmul.msk.bf16.gmra.mxu3 %vm512_vm1, %v2434_v11 }
  0x90   : > { %2019 = vmatmul.msk.bf16.gmra.mxu0 %vm512_vm1, %v2432_v10 }
  0x91   : > { %2033 = vmatmul.msk.bf16.gmra.mxu1 %vm512_vm1, %v2457_v23 }
  0x92   : > { %1992 = vmatmul.msk.bf16.gmra.mxu2 %vm512_vm1, %v2457_v23 }
  0x93   : > { %2006 = vmatmul.msk.bf16.gmra.mxu3 %vm512_vm1, %v2347_v13 }
  0xa0   : > { %2020 = vmatmul.msk.bf16.gmra.mxu0 %vm512_vm1, %v2345_v12 }
  0xa1   : > { %2034 = vmatmul.msk.bf16.gmra.mxu1 %vm512_vm1, %v2467_v26 }
  0xa2   : > { %1993 = vmatmul.msk.bf16.gmra.mxu2 %vm512_vm1, %v2467_v26 }
  0xa3   : > { %2007 = vmatmul.msk.bf16.gmra.mxu3 %vm512_vm1, %v2380_v35 }
  0xa5   : > { %v663_v27 = vpop.f32.mrf.mxu2 }
  0xa6   : > { %v742_v28 = vpop.f32.mrf.mxu3 }
  0xa7   : > { %v2477_v29 = vadd.f32 %v742_v28, %v663_v27  ;;  %v1020_v28 = vld [vmem:[#allocation2 + $0xc1] sm:$0xff] }
  0xad   : > { %v643_v33 = vpop.f32.mrf.mxu0  ;;  %v665_v38 = vpop.f32.mrf.mxu2 }
  0xae   : > { %v722_v36 = vpop.f32.mrf.mxu1  ;;  %v744_v39 = vpop.f32.mrf.mxu3 }
  0xaf   : > { %v2481_v37 = vadd.f32 %v722_v36, %v643_v33  ;;  %v2483_v40 = vadd.f32 %v744_v39, %v665_v38  ;;  %v1143_v33 = vld [vmem:[#allocation2 + $0xca] sm:$0xff]  ;;  %v2541_v36 = vpack.c.bf16 %v1021_v30, %v1020_v28 }
  0xb0   : > { %2021 = vmatmul.msk.bf16.gmra.mxu0 %vm512_vm1, %v2378_v34  ;;  %v2543_v38 = vpack.c.bf16 %v1143_v33, %v1142_v31 }
  0xb1   : > { %2035 = vmatmul.msk.bf16.gmra.mxu1 %vm512_vm1, %v2479_v32 }
  0xb2   : > { %1994 = vmatmul.msk.bf16.gmra.mxu2 %vm512_vm1, %v2479_v32 }
  0xb3   : > { %2008 = vmatmul.msk.bf16.gmra.mxu3 %vm512_vm1, %v2396_v51 }
  0xb5   : > { %v2497_v43 = vpop.f32.mrf.mxu0  ;;  %v668_v45 = vpop.f32.mrf.mxu2 }
  0xb6   : > { %v2499_v44 = vpop.f32.mrf.mxu1  ;;  %v747_v46 = vpop.f32.mrf.mxu3 }
  0xb7   : > { %v2501_v47 = vadd.f32 %v747_v46, %v668_v45  ;;  %v725_v4 = vadd.f32 %v2499_v44, %v2497_v43 }
  0xbd   : > { %v648_v53 = vpop.f32.mrf.mxu0  ;;  %v670_v56 = vpop.f32.mrf.mxu2 }
  0xbe   : > { %v727_v54 = vpop.f32.mrf.mxu1  ;;  %v749_v57 = vpop.f32.mrf.mxu3 }
  0xbf   : > { %v2505_v55 = vadd.f32 %v727_v54, %v648_v53  ;;  %v2507_v58 = vadd.f32 %v749_v57, %v670_v56  ;;  %v1681_v53 = vld [vmem:[%s2796_s6] sm:$0xf] }
  0xc0   : > { %2022 = vmatmul.msk.bf16.gmra.mxu0 %vm512_vm1, %v2394_v50  ;;  %v1713_v57 = vsel %vm1711_vm2, %v1681_v53, 0 }
  0xc1   : > { %2036 = vmatmul.msk.bf16.gmra.mxu1 %vm512_vm1, %v2503_v52 }
  0xc2   : > { %1995 = vmatmul.msk.bf16.gmra.mxu2 %vm512_vm1, %v2503_v52  ;;  %1722 = vmatpush.bf16.msra.mxu1 %v1713_v57 }
  0xc3   : > { %2009 = vmatmul.msk.bf16.gmra.mxu3 %vm512_vm1, %v2416_v1 }
  0xc5   : > { %v2517_v59 = vpop.f32.mrf.mxu0  ;;  %v673_v61 = vpop.f32.mrf.mxu2 }
  0xc6   : > { %v2519_v60 = vpop.f32.mrf.mxu1  ;;  %v752_v2 = vpop.f32.mrf.mxu3 }
  0xc7   : > { %v2521_v3 = vadd.f32 %v752_v2, %v673_v61 }
  0xcd   : > { %v653_v9 = vpop.f32.mrf.mxu0  ;;  %v675_v16 = vpop.f32.mrf.mxu2 }
  0xce   : > { %v732_v14 = vpop.f32.mrf.mxu1  ;;  %v754_v17 = vpop.f32.mrf.mxu3 }
  0xcf   : > { %v2525_v15 = vadd.f32 %v732_v14, %v653_v9  ;;  %v2529_v19 = vadd.f32 %v754_v17, %v675_v16 }
  0xd0   : > { %2023 = vmatmul.msk.bf16.gmra.mxu0 %vm512_vm1, %v2414_v0 }
  0xd1   : > { %2037 = vmatmul.msk.bf16.gmra.mxu1 %vm512_vm1, %v2523_v8 }
  0xd2   : > { %1996 = vmatmul.msk.bf16.gmra.mxu2 %vm512_vm1, %v2523_v8 }
  0xd3   : > { %2010 = vmatmul.msk.bf16.gmra.mxu3 %vm512_vm1, %v2527_v18 }
  0xd5   : > { %v655_v21 = vpop.f32.mrf.mxu0  ;;  %v678_v24 = vpop.f32.mrf.mxu2 }
  0xd6   : > { %v734_v22 = vpop.f32.mrf.mxu1  ;;  %v757_v25 = vpop.f32.mrf.mxu3 }
  0xd7   : > { %v2539_v27 = vadd.f32 %v757_v25, %v678_v24  ;;  %v730_v24 = vadd.f32 %v2519_v60, %v2517_v59 }
  0xdd   : > { %v658_v39 = vpop.f32.mrf.mxu0  ;;  %v680_v45 = vpop.f32.mrf.mxu2 }
  0xde   : > { %v737_v41 = vpop.f32.mrf.mxu1  ;;  %v759_v46 = vpop.f32.mrf.mxu3 }
  0xdf   : > { %v2545_v42 = vadd.f32 %v737_v41, %v658_v39  ;;  %v2547_v48 = vadd.f32 %v759_v46, %v680_v45  ;;  %v735_v41 = vadd.f32 %v734_v22, %v655_v21 }
  0xe0   : > { %2024 = vmatmul.msk.bf16.gmra.mxu0 %vm512_vm1, %v2541_v36 }
  0xe1   : > { %2038 = vmatmul.msk.bf16.gmra.mxu1 %vm512_vm1, %v2543_v38 }
  0xe2   : > { %2045 = vmatmul.msk.bf16.vlgmr.msra.gmra.mxu2 %vm512_vm1, %v2412_v63 }
  0xe3   : > { %2059 = vmatmul.msk.bf16.vlgmr.msra.gmra.mxu3 %vm512_vm1, %v2410_v62 }
  0xe5   : > { %v660_v49 = vpop.f32.mrf.mxu0  ;;  %v828_v54 = vpop.f32.mrf.mxu2 }
  0xe6   : > { %v950_v56 = vpop.f32.mrf.mxu3  ;;  %v868_v61 = vadd.f32 %v828_v54, %v2481_v37 }
  0xe8   : > { %v990_v2 = vadd.f32 %v950_v56, %v868_v61  ;;  %v739_v61 = vpop.f32.mrf.mxu1 }
  0xed   : > { %v1072_v63 = vpop.f32.mrf.mxu0  ;;  %v830_v62 = vpop.f32.mrf.mxu2 }
  0xee   : > { %v2563_v5 = vadd.f32 %v1072_v63, %v990_v2  ;;  %v952_v6 = vpop.f32.mrf.mxu3  ;;  %v869_v7 = vadd.f32 %v830_v62, %v725_v4 }
  0xf0   : > { %2073 = vmatmul.msk.bf16.vlgmr.msra.gmra.mxu0 %vm512_vm1, %v2447_v20  ;;  %v991_v9 = vadd.f32 %v952_v6, %v869_v7 }
  0xf2   : > { %2046 = vmatmul.msk.bf16.gmra.mxu2 %vm512_vm1, %v2434_v11 }
  0xf3   : > { %2060 = vmatmul.msk.bf16.gmra.mxu3 %vm512_vm1, %v2432_v10 }
  0xf5   : > { %v1074_v37 = vpop.f32.mrf.mxu0  ;;  %v833_v43 = vpop.f32.mrf.mxu2 }
  0xf6   : > { %v2571_v14 = vadd.f32 %v1074_v37, %v991_v9  ;;  %v955_v44 = vpop.f32.mrf.mxu3  ;;  %v870_v16 = vadd.f32 %v833_v43, %v2505_v55 }
  0xf8   : > { %v992_v17 = vadd.f32 %v955_v44, %v870_v16  ;;  %v2153_v16 = vld [vmem:[%s458_s18] sm:%s2152_s13] }
  0xf9   : > { %549 = vst.msk [vmem:[#allocation2 + $0xd9] sm:$0xff] %vm512_vm1, %v2153_v16 }
  0xfd   : > { %v1077_v25 = vpop.f32.mrf.mxu0  ;;  %v835_v28 = vpop.f32.mrf.mxu2 }
  0xfe   : > { %v2576_v20 = vadd.f32 %v1077_v25, %v992_v17  ;;  %v957_v30 = vpop.f32.mrf.mxu3  ;;  %v871_v11 = vadd.f32 %v835_v28, %v730_v24  ;;  %v2156_v17 = vld [vmem:[%s458_s18 + $0x8] sm:%s2152_s13] }
  0xff   : > { %550 = vst.msk [vmem:[#allocation2 + $0xe1] sm:$0xff] %vm512_vm1, %v2156_v17 }
 0x100   : > { %2074 = vmatmul.msk.bf16.gmra.mxu0 %vm512_vm1, %v2457_v23  ;;  %v993_v10 = vadd.f32 %v957_v30, %v871_v11 }
 0x102   : > { %2047 = vmatmul.msk.bf16.gmra.mxu2 %vm512_vm1, %v2347_v13 }
 0x103   : > { %2061 = vmatmul.msk.bf16.gmra.mxu3 %vm512_vm1, %v2345_v12 }
 0x105   : > { %v1079_v55 = vpop.f32.mrf.mxu0  ;;  %v838_v59 = vpop.f32.mrf.mxu2 }
 0x106   : > { %v2584_v31 = vadd.f32 %v1079_v55, %v993_v10  ;;  %v960_v60 = vpop.f32.mrf.mxu3  ;;  %v872_v33 = vadd.f32 %v838_v59, %v2525_v15 }
 0x108   : > { %v994_v39 = vadd.f32 %v960_v60, %v872_v33  ;;  %v1194_v60 = vpop.f32.mrf.mxu1 }
 0x10d   : > { %v1082_v45 = vpop.f32.mrf.mxu0  ;;  %v840_v23 = vpop.f32.mrf.mxu2 }
 0x10e   : > { %v2587_v46 = vadd.f32 %v1082_v45, %v994_v39  ;;  %v962_v53 = vpop.f32.mrf.mxu3  ;;  %v873_v54 = vadd.f32 %v840_v23, %v735_v41 }
 0x110   : > { %2075 = vmatmul.msk.bf16.gmra.mxu0 %vm512_vm1, %v2467_v26  ;;  %v995_v12 = vadd.f32 %v962_v53, %v873_v54  ;;  %v1266_v53 = vld [vmem:[#allocation2 + $0xe0] sm:$0xff] }
 0x111   : > { %v1387_v54 = vld [vmem:[#allocation2 + $0xd9] sm:$0xff] }
 0x112   : > { %2048 = vmatmul.msk.bf16.gmra.mxu2 %vm512_vm1, %v2380_v35  ;;  %v740_v35 = vadd.f32 %v739_v61, %v660_v49 }
 0x113   : > { %2062 = vmatmul.msk.bf16.gmra.mxu3 %vm512_vm1, %v2378_v34 }
 0x115   : > { %v1084_v13 = vpop.f32.mrf.mxu0  ;;  %v843_v21 = vpop.f32.mrf.mxu2 }
 0x116   : > { %v2595_v15 = vadd.f32 %v1084_v13, %v995_v12  ;;  %v965_v22 = vpop.f32.mrf.mxu3  ;;  %v874_v56 = vadd.f32 %v843_v21, %v2545_v42  ;;  %v1196_v12 = vpop.f32.mrf.mxu1 }
 0x118   : > { %v996_v57 = vadd.f32 %v965_v22, %v874_v56 }
 0x11d   : > { %v1087_v26 = vpop.f32.mrf.mxu0  ;;  %v845_v2 = vpop.f32.mrf.mxu2 }
 0x11e   : > { %v2603_v34 = vadd.f32 %v1087_v26, %v996_v57  ;;  %v967_v4 = vpop.f32.mrf.mxu3  ;;  %v875_v63 = vadd.f32 %v845_v2, %v740_v35 }
 0x120   : > { %2076 = vmatmul.msk.bf16.gmra.mxu0 %vm512_vm1, %v2479_v32  ;;  %v997_v42 = vadd.f32 %v967_v4, %v875_v63  ;;  %v1199_v4 = vpop.f32.mrf.mxu1 }
 0x122   : > { %2049 = vmatmul.msk.bf16.gmra.mxu2 %vm512_vm1, %v2396_v51 }
 0x123   : > { %2063 = vmatmul.msk.bf16.gmra.mxu3 %vm512_vm1, %v2394_v50 }
 0x125   : > { %v1089_v49 = vpop.f32.mrf.mxu0  ;;  %v848_v6 = vpop.f32.mrf.mxu2 }
 0x126   : > { %v2616_v62 = vadd.f32 %v1089_v49, %v997_v42  ;;  %v970_v7 = vpop.f32.mrf.mxu3  ;;  %v876_v9 = vadd.f32 %v848_v6, %v2477_v29  ;;  %v1509_v49 = vld [vmem:[#allocation2 + $0xda] sm:$0xff]  ;;  %v1510_v6 = vld [vmem:[#allocation2 + $0xe2] sm:$0xff] }
 0x128   : > { %v998_v32 = vadd.f32 %v970_v7, %v876_v9 }
 0x12d   : > { %v1092_v37 = vpop.f32.mrf.mxu0  ;;  %v850_v43 = vpop.f32.mrf.mxu2 }
 0x12e   : > { %v2622_v51 = vadd.f32 %v1092_v37, %v998_v32  ;;  %v972_v50 = vpop.f32.mrf.mxu3  ;;  %v877_v44 = vadd.f32 %v850_v43, %v2483_v40  ;;  %v1201_v43 = vpop.f32.mrf.mxu1 }
 0x130   : > { %2077 = vmatmul.msk.bf16.gmra.mxu0 %vm512_vm1, %v2503_v52  ;;  %v999_v29 = vadd.f32 %v972_v50, %v877_v44 }
 0x132   : > { %2050 = vmatmul.msk.bf16.gmra.mxu2 %vm512_vm1, %v2416_v1 }
 0x133   : > { %2064 = vmatmul.msk.bf16.gmra.mxu3 %vm512_vm1, %v2414_v0 }
 0x135   : > { %v1094_v40 = vpop.f32.mrf.mxu0  ;;  %v853_v25 = vpop.f32.mrf.mxu2 }
 0x136   : > { %v2636_v24 = vadd.f32 %v1094_v40, %v999_v29  ;;  %v975_v28 = vpop.f32.mrf.mxu3  ;;  %v878_v52 = vadd.f32 %v853_v25, %v2501_v47  ;;  %v1234_v29 = vadd.f32 %v1194_v60, %v2563_v5  ;;  %v1204_v25 = vpop.f32.mrf.mxu1  ;;  %v2678_v60 = vld [vmem:[%s2795_s5] ss:$0 sm:$0xff] }
 0x138   : > { %v1000_v30 = vadd.f32 %v975_v28, %v878_v52  ;;  %v1235_v52 = vadd.f32 %v1196_v12, %v2571_v14 }
 0x13d   : > { %v1097_v11 = vpop.f32.mrf.mxu0  ;;  %v855_v1 = vpop.f32.mrf.mxu2 }
 0x13e   : > { %v2639_v10 = vadd.f32 %v1097_v11, %v1000_v30  ;;  %v977_v55 = vpop.f32.mrf.mxu3  ;;  %v879_v0 = vadd.f32 %v855_v1, %v2507_v58  ;;  %v1265_v58 = vld [vmem:[#allocation2 + $0xd8] sm:$0xff] }
 0x140   : > { %2078 = vmatmul.msk.bf16.gmra.mxu0 %vm512_vm1, %v2523_v8  ;;  %v1001_v59 = vadd.f32 %v977_v55, %v879_v0  ;;  %v1388_v8 = vld [vmem:[#allocation2 + $0xe1] sm:$0xff]  ;;  %v2672_v0 = vld [vmem:[%s2794_s4] ss:$0 sm:$0xff] }
 0x141   : > { %v1396_v56 = vpack.c.bf16 %v1388_v8, %v1387_v54 }
 0x142   : > { %2051 = vmatmul.msk.bf16.gmra.mxu2 %vm512_vm1, %v2527_v18 }
 0x143   : > { %2065 = vmatmul.msk.bf16.gmra.mxu3 %vm512_vm1, %v2541_v36  ;;  %v1274_v36 = vpack.c.bf16 %v1266_v53, %v1265_v58 }
 0x145   : > { %v1099_v47 = vpop.f32.mrf.mxu0  ;;  %v858_v39 = vpop.f32.mrf.mxu2 }
 0x146   : > { %v2648_v33 = vadd.f32 %v1099_v47, %v1001_v59  ;;  %v980_v41 = vpop.f32.mrf.mxu3  ;;  %v880_v45 = vadd.f32 %v858_v39, %v2521_v3  ;;  %v1206_v47 = vpop.f32.mrf.mxu1  ;;  %v1236_v39 = vadd.f32 %v1199_v4, %v2576_v20 }
 0x148   : > { %v1002_v23 = vadd.f32 %v980_v41, %v880_v45 }
 0x14d   : > { %v1102_v13 = vpop.f32.mrf.mxu0  ;;  %v860_v18 = vpop.f32.mrf.mxu2 }
 0x14e   : > { %v2651_v21 = vadd.f32 %v1102_v13, %v1002_v23  ;;  %v982_v22 = vpop.f32.mrf.mxu3  ;;  %v881_v57 = vadd.f32 %v860_v18, %v2529_v19  ;;  %v1518_v19 = vpack.c.bf16 %v1510_v6, %v1509_v49 }
 0x150   : > { %2079 = vmatmul.msk.bf16.gmra.mxu0 %vm512_vm1, %v2543_v38  ;;  %v1003_v61 = vadd.f32 %v982_v22, %v881_v57  ;;  %v1237_v22 = vadd.f32 %v1201_v43, %v2584_v31 }
 0x152   : > { %2052 = vmatmul.msk.bf16.gmra.mxu2 %vm512_vm1, %v1274_v36 }
 0x153   : > { %2066 = vmatmul.msk.bf16.gmra.mxu3 %vm512_vm1, %v1396_v56 }
 0x155   : > { %v1104_v3 = vpop.f32.mrf.mxu0  ;;  %v863_v26 = vpop.f32.mrf.mxu2 }
 0x156   : > { %v2658_v35 = vadd.f32 %v1104_v3, %v1003_v61  ;;  %v985_v2 = vpop.f32.mrf.mxu3  ;;  %v882_v63 = vadd.f32 %v863_v26, %v2539_v27  ;;  %v1209_v61 = vpop.f32.mrf.mxu1 }
 0x158   : > { %v1004_v42 = vadd.f32 %v985_v2, %v882_v63 }
 0x15d   : > { %v1107_v7 = vpop.f32.mrf.mxu0  ;;  %v865_v38 = vpop.f32.mrf.mxu2 }
 0x15e   : > { %v2661_v9 = vadd.f32 %v1107_v7, %v1004_v42  ;;  %v987_v32 = vpop.f32.mrf.mxu3  ;;  %v883_v37 = vadd.f32 %v865_v38, %v2547_v48  ;;  %v1238_v42 = vadd.f32 %v1204_v25, %v2587_v46 }
 0x160   : > { %2080 = vmatmul.msk.bf16.gmra.mxu0 %vm512_vm1, %v1518_v19  ;;  %v1005_v50 = vadd.f32 %v987_v32, %v883_v37  ;;  %v1211_v32 = vpop.f32.mrf.mxu1 }
 0x165   : > { %v1109_v44 = vpop.f32.mrf.mxu0  ;;  %v1317_v27 = vpop.f32.mrf.mxu2 }
 0x166   : > { %v2666_v16 = vadd.f32 %v1109_v44, %v1005_v50  ;;  %v1439_v17 = vpop.f32.mrf.mxu3  ;;  %v1357_v40 = vadd.f32 %v1317_v27, %v1234_v29  ;;  %v1239_v29 = vadd.f32 %v1206_v47, %v2595_v15 }
 0x168   : > { %v1479_v28 = vadd.f32 %v1439_v17, %v1357_v40 }
 0x16d   : > { %v1561_v30 = vpop.f32.mrf.mxu0  ;;  %v1319_v11 = vpop.f32.mrf.mxu2 }
 0x16e   : > { %v1441_v1 = vpop.f32.mrf.mxu3  ;;  %v1358_v48 = vadd.f32 %v1319_v11, %v1235_v52  ;;  %v1601_v55 = vadd.f32 %v1561_v30, %v1479_v28  ;;  %v1214_v30 = vpop.f32.mrf.mxu1 }
 0x170   : > { %v1480_v5 = vadd.f32 %v1441_v1, %v1358_v48  ;;  %v1621_v59 = vmul.f32 %v2672_v0, %v1601_v55  ;;  %v1240_v48 = vadd.f32 %v1209_v61, %v2603_v34 }
 0x172   : > { %v1641_v58 = vadd.f32 %v2678_v60, %v1621_v59 }
 0x174   : > { %v1657_v12 = vmax.f32 %v1641_v58, 0.0  ;;  %v1241_v58 = vadd.f32 %v1211_v32, %v2616_v62 }
 0x175   : > { %v1563_v14 = vpop.f32.mrf.mxu0  ;;  %v1322_v45 = vpop.f32.mrf.mxu2 }
 0x176   : > { %v1602_v41 = vadd.f32 %v1563_v14, %v1480_v5  ;;  %v1444_v23 = vpop.f32.mrf.mxu3  ;;  %v1359_v54 = vadd.f32 %v1322_v45, %v1236_v39 }
 0x178   : > { %v1622_v53 = vmul.f32 %v2672_v0, %v1602_v41  ;;  %v1481_v18 = vadd.f32 %v1444_v23, %v1359_v54 }
 0x17a   : > { %v1642_v8 = vadd.f32 %v2678_v60, %v1622_v53  ;;  %v1216_v53 = vpop.f32.mrf.mxu1 }
 0x17c   : > { %v1658_v13 = vmax.f32 %v1642_v8, 0.0 }
 0x17d   : > { %v1566_v36 = vpop.f32.mrf.mxu0  ;;  %v1324_v57 = vpop.f32.mrf.mxu2 }
 0x17e   : > { %v1673_v56 = vpack.c.bf16 %v1658_v13, %v1657_v12  ;;  %v1446_v20 = vpop.f32.mrf.mxu3  ;;  %v1360_v3 = vadd.f32 %v1324_v57, %v1237_v22  ;;  %v1603_v26 = vadd.f32 %v1566_v36, %v1481_v18  ;;  %v1242_v57 = vadd.f32 %v1214_v30, %v2622_v51 }
 0x180   : > { %2081 = vmatmul.msk.bf16.vlgmr.msra.gmra.mxu1 %vm1686_vm3, %v1673_v56  ;;  %v1482_v2 = vadd.f32 %v1446_v20, %v1360_v3  ;;  %v1623_v4 = vmul.f32 %v2672_v0, %v1603_v26 }
 0x182   : > { %v1643_v31 = vadd.f32 %v2678_v60, %v1623_v4  ;;  %v1219_v26 = vpop.f32.mrf.mxu1 }
 0x184   : > { %v1659_v43 = vmax.f32 %v1643_v31, 0.0 }
 0x185   : > { %v1568_v63 = vpop.f32.mrf.mxu0  ;;  %v1327_v6 = vpop.f32.mrf.mxu2 }
 0x186   : > { %v1604_v49 = vadd.f32 %v1568_v63, %v1482_v2  ;;  %v1449_v19 = vpop.f32.mrf.mxu3  ;;  %v1361_v38 = vadd.f32 %v1327_v6, %v1238_v42 }
 0x188   : > { %v1624_v7 = vmul.f32 %v2672_v0, %v1604_v49  ;;  %v1483_v44 = vadd.f32 %v1449_v19, %v1361_v38  ;;  %v1243_v19 = vadd.f32 %v1216_v53, %v2636_v24 }
 0x18a   : > { %v1644_v37 = vadd.f32 %v2678_v60, %v1624_v7 }
 0x18c   : > { %v1660_v50 = vmax.f32 %v1644_v37, 0.0 }
 0x18d   : > { %v1571_v27 = vpop.f32.mrf.mxu0  ;;  %v1329_v40 = vpop.f32.mrf.mxu2 }
 0x18e   : > { %v1674_v17 = vpack.c.bf16 %v1660_v50, %v1659_v43  ;;  %v1451_v46 = vpop.f32.mrf.mxu3  ;;  %v1362_v25 = vadd.f32 %v1329_v40, %v1239_v29  ;;  %v1605_v28 = vadd.f32 %v1571_v27, %v1483_v44  ;;  %v1221_v43 = vpop.f32.mrf.mxu1  ;;  %v1244_v27 = vadd.f32 %v1219_v26, %v2639_v10 }
 0x190   : > { %2082 = vmatmul.msk.bf16.gmra.mxu1 %vm1686_vm3, %v1674_v17  ;;  %v1484_v52 = vadd.f32 %v1451_v46, %v1362_v25  ;;  %v1625_v11 = vmul.f32 %v2672_v0, %v1605_v28 }
 0x192   : > { %v1645_v15 = vadd.f32 %v2678_v60, %v1625_v11 }
 0x194   : > { %v1661_v41 = vmax.f32 %v1645_v15, 0.0 }
 0x195   : > { %v1573_v1 = vpop.f32.mrf.mxu0  ;;  %v1332_v5 = vpop.f32.mrf.mxu2 }
 0x196   : > { %v1606_v55 = vadd.f32 %v1573_v1, %v1484_v52  ;;  %v1454_v59 = vpop.f32.mrf.mxu3  ;;  %v1363_v14 = vadd.f32 %v1332_v5, %v1240_v48  ;;  %v1224_v30 = vpop.f32.mrf.mxu1 }
 0x198   : > { %v1626_v47 = vmul.f32 %v2672_v0, %v1606_v55  ;;  %v1485_v23 = vadd.f32 %v1454_v59, %v1363_v14  ;;  %v1245_v55 = vadd.f32 %v1221_v43, %v2648_v33 }
 0x19a   : > { %v1646_v39 = vadd.f32 %v2678_v60, %v1626_v47 }
 0x19c   : > { %v1662_v45 = vmax.f32 %v1646_v39, 0.0 }
 0x19d   : > { %v1576_v54 = vpop.f32.mrf.mxu0  ;;  %v1334_v12 = vpop.f32.mrf.mxu2 }
 0x19e   : > { %v1675_v8 = vpack.c.bf16 %v1662_v45, %v1661_v41  ;;  %v1456_v34 = vpop.f32.mrf.mxu3  ;;  %v1364_v13 = vadd.f32 %v1334_v12, %v1241_v58  ;;  %v1607_v18 = vadd.f32 %v1576_v54, %v1485_v23  ;;  %v1226_v45 = vpop.f32.mrf.mxu1  ;;  %v1246_v58 = vadd.f32 %v1224_v30, %v2651_v21 }
 0x1a0   : > { %2083 = vmatmul.msk.bf16.gmra.mxu1 %vm1686_vm3, %v1675_v8  ;;  %v1486_v22 = vadd.f32 %v1456_v34, %v1364_v13  ;;  %v1627_v36 = vmul.f32 %v2672_v0, %v1607_v18 }
 0x1a2   : > { %v1647_v62 = vadd.f32 %v2678_v60, %v1627_v36 }
 0x1a4   : > { %v1663_v42 = vmax.f32 %v1647_v62, 0.0 }
 0x1a5   : > { %v1578_v56 = vpop.f32.mrf.mxu0  ;;  %v1337_v61 = vpop.f32.mrf.mxu2 }
 0x1a6   : > { %v1608_v20 = vadd.f32 %v1578_v56, %v1486_v22  ;;  %v1459_v3 = vpop.f32.mrf.mxu3  ;;  %v1365_v4 = vadd.f32 %v1337_v61, %v1242_v57  ;;  %v1247_v56 = vadd.f32 %v1226_v45, %v2658_v35  ;;  %v1229_v26 = vpop.f32.mrf.mxu1 }
 0x1a8   : > { %v1628_v2 = vmul.f32 %v2672_v0, %v1608_v20  ;;  %v1487_v6 = vadd.f32 %v1459_v3, %v1365_v4 }
 0x1aa   : > { %v1648_v63 = vadd.f32 %v2678_v60, %v1628_v2 }
 0x1ac   : > { %v1664_v49 = vmax.f32 %v1648_v63, 0.0 }
 0x1ad   : > { %v1581_v31 = vpop.f32.mrf.mxu0  ;;  %v1339_v38 = vpop.f32.mrf.mxu2 }
 0x1ae   : > { %v1676_v7 = vpack.c.bf16 %v1664_v49, %v1663_v42  ;;  %v1461_v51 = vpop.f32.mrf.mxu3  ;;  %v1366_v32 = vadd.f32 %v1339_v38, %v1243_v19  ;;  %v1609_v37 = vadd.f32 %v1581_v31, %v1487_v6  ;;  %v1248_v42 = vadd.f32 %v1229_v26, %v2661_v9  ;;  %v1231_v38 = vpop.f32.mrf.mxu1 }
 0x1b0   : > { %2084 = vmatmul.msk.bf16.gmra.mxu1 %vm1686_vm3, %v1676_v7  ;;  %v1488_v50 = vadd.f32 %v1461_v51, %v1366_v32  ;;  %v1629_v44 = vmul.f32 %v2672_v0, %v1609_v37 }
 0x1b2   : > { %v1649_v24 = vadd.f32 %v2678_v60, %v1629_v44 }
 0x1b4   : > { %v1665_v11 = vmax.f32 %v1649_v24, 0.0 }
 0x1b5   : > { %v1583_v29 = vpop.f32.mrf.mxu0  ;;  %v1342_v40 = vpop.f32.mrf.mxu2 }
 0x1b6   : > { %v1610_v17 = vadd.f32 %v1583_v29, %v1488_v50  ;;  %v1464_v46 = vpop.f32.mrf.mxu3  ;;  %v1367_v28 = vadd.f32 %v1342_v40, %v1244_v27  ;;  %v1249_v50 = vadd.f32 %v1231_v38, %v2666_v16 }
 0x1b8   : > { %v1630_v25 = vmul.f32 %v2672_v0, %v1610_v17  ;;  %v1489_v48 = vadd.f32 %v1464_v46, %v1367_v28 }
 0x1ba   : > { %v1650_v52 = vadd.f32 %v2678_v60, %v1630_v25 }
 0x1bc   : > { %v1666_v1 = vmax.f32 %v1650_v52, 0.0 }
 0x1bd   : > { %v1586_v5 = vpop.f32.mrf.mxu0  ;;  %v1344_v15 = vpop.f32.mrf.mxu2 }
 0x1be   : > { %v1677_v59 = vpack.c.bf16 %v1666_v1, %v1665_v11  ;;  %v1466_v10 = vpop.f32.mrf.mxu3  ;;  %v1368_v47 = vadd.f32 %v1344_v15, %v1245_v55  ;;  %v1611_v14 = vadd.f32 %v1586_v5, %v1489_v48  ;;  %v2159_v55 = vld [vmem:[%s2797_s7] ss:$0 sm:$0xff] }
 0x1c0   : > { %2085 = vmatmul.msk.bf16.gmra.mxu1 %vm1686_vm3, %v1677_v59  ;;  %v1490_v39 = vadd.f32 %v1466_v10, %v1368_v47  ;;  %v1631_v41 = vmul.f32 %v2672_v0, %v1611_v14 }
 0x1c2   : > { %v1651_v33 = vadd.f32 %v2678_v60, %v1631_v41 }
 0x1c4   : > { %v1667_v18 = vmax.f32 %v1651_v33, 0.0 }
 0x1c5   : > { %v1588_v23 = vpop.f32.mrf.mxu0  ;;  %v1347_v54 = vpop.f32.mrf.mxu2 }
 0x1c6   : > { %v1612_v53 = vadd.f32 %v1588_v23, %v1490_v39  ;;  %v1469_v8 = vpop.f32.mrf.mxu3  ;;  %v1369_v34 = vadd.f32 %v1347_v54, %v1246_v58 }
 0x1c8   : > { %v1632_v12 = vmul.f32 %v2672_v0, %v1612_v53  ;;  %v1491_v36 = vadd.f32 %v1469_v8, %v1369_v34 }
 0x1ca   : > { %v1652_v13 = vadd.f32 %v2678_v60, %v1632_v12 }
 0x1cc   : > { %v1668_v22 = vmax.f32 %v1652_v13, 0.0 }
 0x1cd   : > { %v1591_v57 = vpop.f32.mrf.mxu0  ;;  %v1349_v61 = vpop.f32.mrf.mxu2 }
 0x1ce   : > { %v1678_v20 = vpack.c.bf16 %v1668_v22, %v1667_v18  ;;  %v1471_v3 = vpop.f32.mrf.mxu3  ;;  %v1370_v21 = vadd.f32 %v1349_v61, %v1247_v56  ;;  %v1613_v62 = vadd.f32 %v1591_v57, %v1491_v36 }
 0x1d0   : > { %2086 = vmatmul.msk.bf16.gmra.mxu1 %vm1686_vm3, %v1678_v20  ;;  %v1492_v2 = vadd.f32 %v1471_v3, %v1370_v21  ;;  %v1633_v4 = vmul.f32 %v2672_v0, %v1613_v62 }
 0x1d2   : > { %v1653_v35 = vadd.f32 %v2678_v60, %v1633_v4 }
 0x1d4   : > { %v1669_v32 = vmax.f32 %v1653_v35, 0.0 }
 0x1d5   : > { %v1593_v63 = vpop.f32.mrf.mxu0  ;;  %v1352_v6 = vpop.f32.mrf.mxu2 }
 0x1d6   : > { %v1614_v49 = vadd.f32 %v1593_v63, %v1492_v2  ;;  %v1474_v19 = vpop.f32.mrf.mxu3  ;;  %v1371_v7 = vadd.f32 %v1352_v6, %v1248_v42 }
 0x1d8   : > { %v1634_v31 = vmul.f32 %v2672_v0, %v1614_v49  ;;  %v1493_v43 = vadd.f32 %v1474_v19, %v1371_v7 }
 0x1da   : > { %v1654_v51 = vadd.f32 %v2678_v60, %v1634_v31 }
 0x1dc   : > { %v1670_v37 = vmax.f32 %v1654_v51, 0.0 }
 0x1dd   : > { %v1596_v44 = vpop.f32.mrf.mxu0  ;;  %v1354_v27 = vpop.f32.mrf.mxu2 }
 0x1de   : > { %v1679_v29 = vpack.c.bf16 %v1670_v37, %v1669_v32  ;;  %v1372_v9 = vadd.f32 %v1354_v27, %v1249_v50  ;;  %v1615_v17 = vadd.f32 %v1596_v44, %v1493_v43  ;;  %v1476_v40 = vpop.f32.mrf.mxu3 }
 0x1e0   : > { %2087 = vmatmul.msk.bf16.gmra.mxu1 %vm1686_vm3, %v1679_v29  ;;  %v1494_v46 = vadd.f32 %v1476_v40, %v1372_v9  ;;  %v1635_v24 = vmul.f32 %v2672_v0, %v1615_v17 }
 0x1e2   : > { %v1655_v52 = vadd.f32 %v2678_v60, %v1635_v24 }
 0x1e4   : > { %v1671_v11 = vmax.f32 %v1655_v52, 0.0 }
 0x1e5   : > { %v1598_v25 = vpop.f32.mrf.mxu0 }
 0x1e6   : > { %v1616_v28 = vadd.f32 %v1598_v25, %v1494_v46 }
 0x1e8   : > { %v1636_v30 = vmul.f32 %v2672_v0, %v1616_v28 }
 0x1ea   : > { %v1656_v16 = vadd.f32 %v2678_v60, %v1636_v30 }
 0x1ec   : > { %v1672_v1 = vmax.f32 %v1656_v16, 0.0 }
 0x1ee   : > { %v1680_v48 = vpack.c.bf16 %v1672_v1, %v1671_v11 }
 0x1f0   : > { %2088 = vmatmul.msk.bf16.gmra.mxu1 %vm1686_vm3, %v1680_v48 }
 0x1fd   : > { %v1724_v0 = vpop.f32.mrf.mxu1 }
 0x1fe   : > { %v1725_v60 = vadd.f32 %v2159_v55, %v1724_v0 }
 0x200   : > { %1764 = vst.msk [vmem:[%s2741_s16] sm:$0xff] %vm512_vm1, %v1725_v60 }
 0x205   : > { %v1726_v5 = vpop.f32.mrf.mxu1 }
 0x206   : > { %v1727_v59 = vadd.f32 %v2159_v55, %v1726_v5 }
 0x208   : > { %1765 = vst.msk [vmem:[%s2741_s16 + $0x8] sm:$0xff] %vm512_vm1, %v1727_v59 }
 0x20d   : > { %v1729_v15 = vpop.f32.mrf.mxu1 }
 0x20e   : > { %v1730_v10 = vadd.f32 %v2159_v55, %v1729_v15 }
 0x210   : > { %1766 = vst.msk [vmem:[%s2741_s16 + $0x10] sm:$0xff] %vm512_vm1, %v1730_v10 }
 0x215   : > { %v1731_v47 = vpop.f32.mrf.mxu1 }
 0x216   : > { %v1732_v14 = vadd.f32 %v2159_v55, %v1731_v47 }
 0x218   : > { %1767 = vst.msk [vmem:[%s2741_s16 + $0x18] sm:$0xff] %vm512_vm1, %v1732_v14 }
 0x21d   : > { %v1734_v39 = vpop.f32.mrf.mxu1 }
 0x21e   : > { %v1735_v41 = vadd.f32 %v2159_v55, %v1734_v39 }
 0x220   : > { %1768 = vst.msk [vmem:[%s2741_s16 + $0x20] sm:$0xff] %vm512_vm1, %v1735_v41 }
 0x225   : > { %v1736_v45 = vpop.f32.mrf.mxu1 }
 0x226   : > { %v1737_v23 = vadd.f32 %v2159_v55, %v1736_v45 }
 0x228   : > { %1769 = vst.msk [vmem:[%s2741_s16 + $0x28] sm:$0xff] %vm512_vm1, %v1737_v23 }
 0x22d   : > { %v1739_v58 = vpop.f32.mrf.mxu1 }
 0x22e   : > { %v1740_v53 = vadd.f32 %v2159_v55, %v1739_v58 }
 0x230   : > { %1770 = vst.msk [vmem:[%s2741_s16 + $0x30] sm:$0xff] %vm512_vm1, %v1740_v53 }
 0x235   : > { %v1741_v54 = vpop.f32.mrf.mxu1 }
 0x236   : > { %v1742_v8 = vadd.f32 %v2159_v55, %v1741_v54 }
 0x238   : > { %1771 = vst.msk [vmem:[%s2741_s16 + $0x38] sm:$0xff] %vm512_vm1, %v1742_v8 }
 0x23d   : > { %v1744_v33 = vpop.f32.mrf.mxu1 }
 0x23e   : > { %v1745_v12 = vadd.f32 %v2159_v55, %v1744_v33 }
 0x240   : > { %1772 = vst.msk [vmem:[%s2741_s16 + $0x40] sm:$0xff] %vm512_vm1, %v1745_v12 }
 0x245   : > { %v1746_v34 = vpop.f32.mrf.mxu1 }
 0x246   : > { %v1747_v13 = vadd.f32 %v2159_v55, %v1746_v34 }
 0x248   : > { %1773 = vst.msk [vmem:[%s2741_s16 + $0x48] sm:$0xff] %vm512_vm1, %v1747_v13 }
 0x24d   : > { %v1749_v18 = vpop.f32.mrf.mxu1 }
 0x24e   : > { %v1750_v22 = vadd.f32 %v2159_v55, %v1749_v18 }
 0x250   : > { %1774 = vst.msk [vmem:[%s2741_s16 + $0x50] sm:$0xff] %vm512_vm1, %v1750_v22 }
 0x255   : > { %v1751_v36 = vpop.f32.mrf.mxu1 }
 0x256   : > { %v1752_v56 = vadd.f32 %v2159_v55, %v1751_v36 }
 0x258   : > { %1775 = vst.msk [vmem:[%s2741_s16 + $0x58] sm:$0xff] %vm512_vm1, %v1752_v56 }
 0x25d   : > { %v1754_v57 = vpop.f32.mrf.mxu1 }
 0x25e   : > { %v1755_v20 = vadd.f32 %v2159_v55, %v1754_v57 }
 0x260   : > { %1776 = vst.msk [vmem:[%s2741_s16 + $0x60] sm:$0xff] %vm512_vm1, %v1755_v20 }
 0x265   : > { %v1756_v61 = vpop.f32.mrf.mxu1 }
 0x266   : > { %v1757_v3 = vadd.f32 %v2159_v55, %v1756_v61 }
 0x268   : > { %1777 = vst.msk [vmem:[%s2741_s16 + $0x68] sm:$0xff] %vm512_vm1, %v1757_v3 }
 0x26d   : > { %v1759_v21 = vpop.f32.mrf.mxu1 }
 0x26e   : > { %v1760_v26 = vadd.f32 %v2159_v55, %v1759_v21 }
 0x270   : > { %1778 = vst.msk [vmem:[%s2741_s16 + $0x70] sm:$0xff] %vm512_vm1, %v1760_v26 }
 0x275   : > { %v1761_v62 = vpop.f32.mrf.mxu1 }
 0x276   : > { %v1762_v2 = vadd.f32 %v2159_v55, %v1761_v62 }
 0x278   : > { %1779 = vst.msk [vmem:[%s2741_s16 + $0x78] sm:$0xff] %vm512_vm1, %v1762_v2 }
 0x279 PF: > { %s18_s9 = sadd.s32 1, %s2198_s9   ;;  %s2800_s27 = smov %s2190_s29 }
 0x27a   : > { %p15_p12 = scmp.ge.s32.totalorder %s18_s9, 6   ;;  %s2801_s28 = smov %s2194_s30 }
 0x27b   : > { %s2802_s29 = smov %s2805_s10  ;;  %s2803_s30 = smov %s2809_s11 }
 0x27c   :  { %17 = sbr.rel (!%p15_p12) target bundleno = 3 (0x3), region = 99 }

</bundles_post_ra>
